<compile_context>
chip_gen: v7x
topology: tpu7x:2x2x1
jax: 0.10.0
libtpu: 0.0.40
codegen_flags: <defaults>
</compile_context>

<pallas_src>
import functools
import math

import jax
import jax.numpy as jnp
from jax.experimental import pallas as pl
from jax.experimental.pallas import tpu as pltpu

EPS = 1e-5
_INV_SQRT2 = 1.0 / math.sqrt(2.0)
# Scoped-VMEM limit: fits under physical VMEM on every generation
# (v5e/v6e: 128 MiB, v7x: 64 MiB) while allowing large tiles.
_VMEM_LIMIT = 48 * 1024 * 1024
# Working-set budget used when sizing fused-kernel tiles (headroom under the
# scoped limit for compiler-internal scratch).
_FUSE_BUDGET = 36 * 1024 * 1024


def _sublane_multiple(dtype):
    # Minimum second-to-last-dim tile per dtype (sublane packing).
    return {4: 8, 2: 16, 1: 32}.get(jnp.dtype(dtype).itemsize, 8)


def _tile(dim, pref):
    # Largest multiple-of-8 tile <= pref that divides `dim`; otherwise the full
    # extent (full-extent blocks are always legal).
    if dim <= pref:
        return dim
    for cand in range(pref, 7, -8):
        if dim % cand == 0:
            return cand
    return dim


def _pad_rows(x2, tm):
    m = x2.shape[0]
    m_pad = pl.cdiv(m, tm) * tm
    if m_pad != m:
        x2 = jnp.pad(x2, ((0, m_pad - m), (0, 0)))
    return x2, m_pad


def _erf_approx(x):
    # Abramowitz & Stegun 7.1.26, |abs error| <= 1.5e-7; only Mosaic-safe ops.
    a1, a2, a3, a4, a5 = 0.254829592, -0.284496736, 1.421413741, -1.453152027, 1.061405429
    p = 0.3275911
    ax = jnp.abs(x)
    t = 1.0 / (1.0 + p * ax)
    poly = ((((a5 * t + a4) * t + a3) * t + a2) * t + a1) * t
    y = 1.0 - poly * jnp.exp(-ax * ax)
    return jnp.where(x < 0, -y, y)


def _gelu_exact(x):
    # Exact (erf-based) GELU, matching torch.nn.GELU() default.
    return 0.5 * x * (1.0 + _erf_approx(x * _INV_SQRT2))


def _ln_rows_f32(x_f32, w_ref, b_ref):
    mean = jnp.mean(x_f32, axis=-1, keepdims=True)
    xc = x_f32 - mean
    var = jnp.mean(xc * xc, axis=-1, keepdims=True)
    y = xc * jax.lax.rsqrt(var + EPS)
    return y * w_ref[...].astype(jnp.float32) + b_ref[...].astype(jnp.float32)


# ----------------------------------------------------------------------------
# Standalone LayerNorm (fallback path when fused LN+matmul would not fit VMEM)
# ----------------------------------------------------------------------------
def _layernorm_kernel(x_ref, w_ref, b_ref, o_ref):
    y = _ln_rows_f32(x_ref[...].astype(jnp.float32), w_ref, b_ref)
    o_ref[...] = y.astype(o_ref.dtype)


def layer_norm(x, weight, bias=None, *, block_rows=512):
    orig_shape = x.shape
    D = orig_shape[-1]
    x2 = x.reshape(-1, D)
    N = x2.shape[0]

    itemsize = jnp.dtype(x.dtype).itemsize
    sub = _sublane_multiple(x.dtype)
    rows_fit = _FUSE_BUDGET // max(1, 4 * D * itemsize)
    rows_fit = max(sub, (rows_fit // sub) * sub)
    n_aligned = ((N + sub - 1) // sub) * sub
    tm = max(sub, (min(block_rows, rows_fit, n_aligned) // sub) * sub)

    x2, n_pad = _pad_rows(x2, tm)
    w2 = weight.reshape(1, D)
    b2 = (bias.reshape(1, D) if bias is not None
          else jnp.zeros((1, D), dtype=weight.dtype))

    out = pl.pallas_call(
        _layernorm_kernel,
        out_shape=jax.ShapeDtypeStruct((n_pad, D), x.dtype),
        grid_spec=pltpu.PrefetchScalarGridSpec(
            num_scalar_prefetch=0,
            grid=(n_pad // tm,),
            in_specs=[pl.BlockSpec((tm, D), lambda i: (i, 0)),
                      pl.BlockSpec((1, D), lambda i: (0, 0)),
                      pl.BlockSpec((1, D), lambda i: (0, 0))],
            out_specs=pl.BlockSpec((tm, D), lambda i: (i, 0)),
        ),
        compiler_params=pltpu.CompilerParams(
            dimension_semantics=("parallel",),
            vmem_limit_bytes=_VMEM_LIMIT),
    )(x2, w2, b2)

    if n_pad != N:
        out = out[:N]
    return out.reshape(orig_shape)


# ----------------------------------------------------------------------------
# Generic tiled matmul: y = x @ W (+ b) (+ residual), optional fused GELU.
# ----------------------------------------------------------------------------
def _linear_kernel(*refs, activation, has_residual):
    if has_residual:
        x_ref, w_ref, b_ref, r_ref, o_ref, acc_ref = refs
    else:
        x_ref, w_ref, b_ref, o_ref, acc_ref = refs

    @pl.when(pl.program_id(2) == 0)
    def _():
        acc_ref[...] = jnp.zeros_like(acc_ref)

    acc_ref[...] += jnp.dot(x_ref[...], w_ref[...],
                            preferred_element_type=jnp.float32)

    @pl.when(pl.program_id(2) == pl.num_programs(2) - 1)
    def _():
        y = acc_ref[...] + b_ref[...].astype(jnp.float32)
        if activation == "gelu":
            y = _gelu_exact(y)
        if has_residual:
            y = y + r_ref[...].astype(jnp.float32)
        o_ref[...] = y.astype(o_ref.dtype)


def linear(x2, w, b=None, *, residual=None, activation=None):
    """y = x2 @ w (+ b) (+ residual). `w` is (in, out), i.e. nn.Linear.weight.T."""
    M, K = x2.shape
    Kw, N = w.shape
    assert K == Kw
    b2 = b.reshape(1, N) if b is not None else jnp.zeros((1, N), dtype=w.dtype)

    tm, tn, tk = _tile(M, 256), _tile(N, 256), _tile(K, 512)
    grid = (M // tm, N // tn, K // tk)
    has_res = residual is not None

    in_specs = [pl.BlockSpec((tm, tk), lambda i, j, k: (i, k)),
                pl.BlockSpec((tk, tn), lambda i, j, k: (k, j)),
                pl.BlockSpec((1, tn), lambda i, j, k: (0, j))]
    args = [x2, w, b2]
    if has_res:
        in_specs.append(pl.BlockSpec((tm, tn), lambda i, j, k: (i, j)))
        args.append(residual)

    return pl.pallas_call(
        functools.partial(_linear_kernel, activation=activation,
                          has_residual=has_res),
        out_shape=jax.ShapeDtypeStruct((M, N), x2.dtype),
        grid_spec=pltpu.PrefetchScalarGridSpec(
            num_scalar_prefetch=0,
            grid=grid,
            in_specs=in_specs,
            out_specs=pl.BlockSpec((tm, tn), lambda i, j, k: (i, j)),
            scratch_shapes=[pltpu.VMEM((tm, tn), jnp.float32)]),
        compiler_params=pltpu.CompilerParams(
            dimension_semantics=("parallel", "parallel", "arbitrary"),
            vmem_limit_bytes=_VMEM_LIMIT),
    )(*args)


# ----------------------------------------------------------------------------
# Fused LayerNorm + Linear (used for ln_1 + c_attn). Full hidden dim stays in
# the row tile, so LN needs no cross-tile reduction and no K split.
# ----------------------------------------------------------------------------
def _ln_linear_kernel(x_ref, lw_ref, lb_ref, w_ref, b_ref, o_ref, *, activation):
    h = _ln_rows_f32(x_ref[...].astype(jnp.float32), lw_ref, lb_ref)
    y = jnp.dot(h.astype(x_ref.dtype), w_ref[...],
                preferred_element_type=jnp.float32)
    y = y + b_ref[...].astype(jnp.float32)
    if activation == "gelu":
        y = _gelu_exact(y)
    o_ref[...] = y.astype(o_ref.dtype)


def fused_ln_linear(x2, ln_w, ln_b, w, b, *, activation=None):
    M, C = x2.shape
    Cw, N = w.shape
    assert C == Cw
    itemsize = jnp.dtype(x2.dtype).itemsize
    sub = _sublane_multiple(x2.dtype)

    tn = _tile(N, 256)
    fixed = 2 * (2 * C + C * tn + tn) * itemsize          # LN params, W, b (2 bufs)
    per_row = 2 * (C + tn) * itemsize + 4 * (C + tn)      # x/out tiles + f32 temps
    if fixed + sub * per_row > _FUSE_BUDGET:
        # Weights too big to keep resident: unfused fallback.
        h = layer_norm(x2, ln_w, ln_b)
        return linear(h, w, b, activation=activation)

    rows = (_FUSE_BUDGET - fixed) // max(1, per_row)
    m_aligned = ((M + sub - 1) // sub) * sub
    tm = max(sub, min(512, (rows // sub) * sub, m_aligned))

    x_pad, m_pad = _pad_rows(x2, tm)
    lw2 = ln_w.reshape(1, C)
    lb2 = (ln_b.reshape(1, C) if ln_b is not None
           else jnp.zeros((1, C), dtype=ln_w.dtype))
    b2 = b.reshape(1, N) if b is not None else jnp.zeros((1, N), dtype=w.dtype)

    out = pl.pallas_call(
        functools.partial(_ln_linear_kernel, activation=activation),
        out_shape=jax.ShapeDtypeStruct((m_pad, N), x2.dtype),
        grid_spec=pltpu.PrefetchScalarGridSpec(
            num_scalar_prefetch=0,
            grid=(m_pad // tm, N // tn),
            in_specs=[pl.BlockSpec((tm, C), lambda i, j: (i, 0)),
                      pl.BlockSpec((1, C), lambda i, j: (0, 0)),
                      pl.BlockSpec((1, C), lambda i, j: (0, 0)),
                      pl.BlockSpec((C, tn), lambda i, j: (0, j)),
                      pl.BlockSpec((1, tn), lambda i, j: (0, j))],
            out_specs=pl.BlockSpec((tm, tn), lambda i, j: (i, j)),
        ),
        compiler_params=pltpu.CompilerParams(
            dimension_semantics=("parallel", "parallel"),
            vmem_limit_bytes=_VMEM_LIMIT),
    )(x_pad, lw2, lb2, w, b2)

    if m_pad != M:
        out = out[:M]
    return out


# ----------------------------------------------------------------------------
# Fully fused MLP branch: out = x + c_proj(GELU(c_fc(LN(x)))).
# The 4*C-wide intermediate never leaves VMEM.
# ----------------------------------------------------------------------------
def _ln_mlp_kernel(x_ref, lw_ref, lb_ref, w1_ref, b1_ref, w2_ref, b2_ref, o_ref):
    x = x_ref[...].astype(jnp.float32)
    h = _ln_rows_f32(x, lw_ref, lb_ref)
    a = jnp.dot(h.astype(x_ref.dtype), w1_ref[...],
                preferred_element_type=jnp.float32)
    a = _gelu_exact(a + b1_ref[...].astype(jnp.float32))
    y = jnp.dot(a.astype(x_ref.dtype), w2_ref[...],
                preferred_element_type=jnp.float32)
    y = y + b2_ref[...].astype(jnp.float32) + x            # fused residual add
    o_ref[...] = y.astype(o_ref.dtype)


def fused_ln_mlp(x2, ln_w, ln_b, w1, b1, w2, b2):
    M, C = x2.shape
    H = w1.shape[1]
    itemsize = jnp.dtype(x2.dtype).itemsize
    sub = _sublane_multiple(x2.dtype)

    fixed = 2 * (2 * C + C * H + H + H * C + C) * itemsize   # LN/W1/b1/W2/b2 (2 bufs)
    per_row = 2 * (2 * C) * itemsize + 4 * (2 * C + 2 * H)   # x/out tiles + f32 temps
    if fixed + sub * per_row > _FUSE_BUDGET:
        # Unfused fallback for very large hidden sizes.
        h = layer_norm(x2, ln_w, ln_b)
        h = linear(h, w1, b1, activation="gelu")
        return linear(h, w2, b2, residual=x2)

    rows = (_FUSE_BUDGET - fixed) // max(1, per_row)
    m_aligned = ((M + sub - 1) // sub) * sub
    tm = max(sub, min(512, (rows // sub) * sub, m_aligned))

    x_pad, m_pad = _pad_rows(x2, tm)
    lw2 = ln_w.reshape(1, C)
    lb2 = (ln_b.reshape(1, C) if ln_b is not None
           else jnp.zeros((1, C), dtype=ln_w.dtype))
    b1_2 = b1.reshape(1, H) if b1 is not None else jnp.zeros((1, H), dtype=w1.dtype)
    b2_2 = b2.reshape(1, C) if b2 is not None else jnp.zeros((1, C), dtype=w2.dtype)

    out = pl.pallas_call(
        _ln_mlp_kernel,
        out_shape=jax.ShapeDtypeStruct((m_pad, C), x2.dtype),
        grid_spec=pltpu.PrefetchScalarGridSpec(
            num_scalar_prefetch=0,
            grid=(m_pad // tm,),
            in_specs=[pl.BlockSpec((tm, C), lambda i: (i, 0)),
                      pl.BlockSpec((1, C), lambda i: (0, 0)),
                      pl.BlockSpec((1, C), lambda i: (0, 0)),
                      pl.BlockSpec((C, H), lambda i: (0, 0)),
                      pl.BlockSpec((1, H), lambda i: (0, 0)),
                      pl.BlockSpec((H, C), lambda i: (0, 0)),
                      pl.BlockSpec((1, C), lambda i: (0, 0))],
            out_specs=pl.BlockSpec((tm, C), lambda i: (i, 0)),
        ),
        compiler_params=pltpu.CompilerParams(
            dimension_semantics=("parallel",),
            vmem_limit_bytes=_VMEM_LIMIT),
    )(x_pad, lw2, lb2, w1, b1_2, w2, b2_2)

    if m_pad != M:
        out = out[:M]
    return out


# ----------------------------------------------------------------------------
# Causal self-attention: a block of (batch*head) slices per grid step, whole T
# in VMEM (batched einsum on the MXU).
# TODO(synk): for long sequences use a flash-style (q-tile, kv-tile) grid.
# ----------------------------------------------------------------------------
def _causal_attn_kernel(q_ref, k_ref, v_ref, o_ref, *, scale):
    q = q_ref[...].astype(jnp.float32)                       # (bh, T, hd)
    k = k_ref[...].astype(jnp.float32)
    v = v_ref[...].astype(jnp.float32)
    s = jnp.einsum("bqd,bkd->bqk", q, k,
                   preferred_element_type=jnp.float32) * scale
    row = jax.lax.broadcasted_iota(jnp.int32, s.shape, 1)
    col = jax.lax.broadcasted_iota(jnp.int32, s.shape, 2)
    s = jnp.where(col <= row, s, -jnp.inf)
    m = jnp.max(s, axis=-1, keepdims=True)
    p = jnp.exp(s - m)
    denom = jnp.sum(p, axis=-1, keepdims=True)
    out = jnp.einsum("bqk,bkd->bqd", p, v,
                     preferred_element_type=jnp.float32) / denom
    o_ref[...] = out.astype(o_ref.dtype)


def causal_attention(q, k, v):
    """Causal scaled-dot-product attention. q/k/v: (B*H, T, hd)."""
    BH, T, hd = q.shape
    itemsize = jnp.dtype(q.dtype).itemsize

    bh_block = 1
    for cand in range(min(BH, 16), 0, -1):
        if BH % cand != 0:
            continue
        est = 2 * 4 * cand * T * hd * itemsize + 4 * cand * T * (T + 2 * hd)
        if est <= _FUSE_BUDGET:
            bh_block = cand
            break

    spec = pl.BlockSpec((bh_block, T, hd), lambda i: (i, 0, 0))
    return pl.pallas_call(
        functools.partial(_causal_attn_kernel, scale=1.0 / math.sqrt(hd)),
        out_shape=jax.ShapeDtypeStruct((BH, T, hd), q.dtype),
        grid_spec=pltpu.PrefetchScalarGridSpec(
            num_scalar_prefetch=0,
            grid=(BH // bh_block,),
            in_specs=[spec, spec, spec],
            out_specs=spec),
        compiler_params=pltpu.CompilerParams(
            dimension_semantics=("parallel",),
            vmem_limit_bytes=_VMEM_LIMIT),
    )(q, k, v)


# ----------------------------------------------------------------------------
# Block forward: x = x + attn(ln_1(x)); x = x + mlp(ln_2(x))
# ----------------------------------------------------------------------------
@functools.partial(jax.jit, static_argnames=("n_head",))
def block_forward(x, params, *, n_head):
    B, T, C = x.shape
    hd = C // n_head
    x2 = x.reshape(B * T, C)

    # --- attention branch: fused ln_1 + QKV projection ---
    qkv = fused_ln_linear(x2, params["ln1_w"], params["ln1_b"],
                          params["attn_w"], params["attn_b"])
    qkv = qkv.reshape(B, T, 3 * C)
    q, k, v = jnp.split(qkv, 3, axis=-1)

    def to_heads(t):
        return (t.reshape(B, T, n_head, hd)
                 .transpose(0, 2, 1, 3)
                 .reshape(B * n_head, T, hd))

    y = causal_attention(to_heads(q), to_heads(k), to_heads(v))
    y = y.reshape(B, n_head, T, hd).transpose(0, 2, 1, 3).reshape(B * T, C)
    # Output projection with the residual add fused into the matmul epilogue.
    # TODO(synk): attn/resid/MLP dropout omitted — eval forward (p = 0.0).
    x2 = linear(y, params["attn_proj_w"], params["attn_proj_b"], residual=x2)

    # --- MLP branch: fused ln_2 + c_fc + GELU + c_proj + residual ---
    x2 = fused_ln_mlp(x2, params["ln2_w"], params["ln2_b"],
                      params["fc_w"], params["fc_b"],
                      params["mlp_proj_w"], params["mlp_proj_b"])
    return x2.reshape(B, T, C)


if __name__ == "__main__":
    # Small shapes consistent with the module: batch=2, seq=8, hidden=32, 4 heads.
    B, T = 2, 8
    n_embd, n_head = 32, 4
    dtype = jnp.float32

    key = jax.random.PRNGKey(0)
    keys = jax.random.split(key, 8)

    def w_init(k, shape):
        return (0.02 * jax.random.normal(k, shape)).astype(dtype)

    params = {
        "ln1_w": jnp.ones((n_embd,), dtype),
        "ln1_b": jnp.zeros((n_embd,), dtype),
        "attn_w": w_init(keys[1], (n_embd, 3 * n_embd)),      # c_attn.weight.T
        "attn_b": w_init(keys[2], (3 * n_embd,)),
        "attn_proj_w": w_init(keys[3], (n_embd, n_embd)),     # c_proj.weight.T
        "attn_proj_b": w_init(keys[4], (n_embd,)),
        "ln2_w": jnp.ones((n_embd,), dtype),
        "ln2_b": jnp.zeros((n_embd,), dtype),
        "fc_w": w_init(keys[5], (n_embd, 4 * n_embd)),        # c_fc.weight.T
        "fc_b": w_init(keys[6], (4 * n_embd,)),
        "mlp_proj_w": w_init(keys[7], (4 * n_embd, n_embd)),  # mlp c_proj.weight.T
        "mlp_proj_b": jnp.zeros((n_embd,), dtype),
    }
    x = jax.random.normal(keys[0], (B, T, n_embd), dtype)

    out = jax.block_until_ready(block_forward(x, params, n_head=n_head))

    # --- plain-JAX reference (same semantics as the PyTorch Block, eval mode) ---
    def ref_ln(h, w, b):
        m = jnp.mean(h, -1, keepdims=True)
        v = jnp.mean((h - m) ** 2, -1, keepdims=True)
        return (h - m) * jax.lax.rsqrt(v + EPS) * w + b

    def ref_block(x):
        hd = n_embd // n_head
        h = ref_ln(x, params["ln1_w"], params["ln1_b"])
        qkv = h @ params["attn_w"] + params["attn_b"]
        q, k, v = jnp.split(qkv, 3, axis=-1)
        def heads(t): return t.reshape(B, T, n_head, hd).transpose(0, 2, 1, 3)
        q, k, v = heads(q), heads(k), heads(v)
        s = jnp.einsum("bhqd,bhkd->bhqk", q, k) / math.sqrt(hd)
        mask = jnp.tril(jnp.ones((T, T), bool))
        s = jnp.where(mask, s, -jnp.inf)
        y = jnp.einsum("bhqk,bhkd->bhqd", jax.nn.softmax(s, axis=-1), v)
        y = y.transpose(0, 2, 1, 3).reshape(B, T, n_embd)
        x = x + y @ params["attn_proj_w"] + params["attn_proj_b"]
        h = ref_ln(x, params["ln2_w"], params["ln2_b"])
        h = jax.nn.gelu(h @ params["fc_w"] + params["fc_b"], approximate=False)
        x = x + h @ params["mlp_proj_w"] + params["mlp_proj_b"]
        return x

    ref = ref_block(x)
    assert out.shape == x.shape
    max_err = float(jnp.max(jnp.abs(out - ref)))
    assert jnp.allclose(out, ref, atol=1e-4, rtol=1e-4), f"mismatch: {max_err}"

    print("KERNEL_OK")
</pallas_src>

<mosaic_0001>
module attributes {stable_mosaic.version = 11 : i64} {
  func.func @_ln_linear_kernel(%arg0: i32, %arg1: i32, %arg2: memref<16x32xf32, #tpu.memory_space<vmem>>, %arg3: memref<1x32xf32, #tpu.memory_space<vmem>>, %arg4: memref<1x32xf32, #tpu.memory_space<vmem>>, %arg5: memref<32x96xf32, #tpu.memory_space<vmem>>, %arg6: memref<1x96xf32, #tpu.memory_space<vmem>>, %arg7: memref<16x96xf32, #tpu.memory_space<vmem>>) attributes {dimension_semantics = [#tpu.dimension_semantics<parallel>, #tpu.dimension_semantics<parallel>], iteration_bounds = array<i64: 1, 1>, scalar_prefetch = 0 : i64, scratch_operands = 0 : i64, tpu.core_type = #tpu.core_type<tc>, window_params = [{transform_indices = @transform_0, window_bounds = array<i64: 16, 32>}, {pipeline_mode = #tpu.pipeline_mode<synchronous>, transform_indices = @transform_1, window_bounds = array<i64: 1, 32>}, {pipeline_mode = #tpu.pipeline_mode<synchronous>, transform_indices = @transform_2, window_bounds = array<i64: 1, 32>}, {transform_indices = @transform_3, window_bounds = array<i64: 32, 96>}, {transform_indices = @transform_4, window_bounds = array<i64: 1, 96>}, {transform_indices = @transform_5, window_bounds = array<i64: 16, 96>}]} {
    %c0 = arith.constant 0 : index
    %c0_0 = arith.constant 0 : index
    %0 = vector.load %arg2[%c0, %c0_0] : memref<16x32xf32, #tpu.memory_space<vmem>>, vector<16x32xf32>
    %cst = arith.constant dense<0.000000e+00> : vector<16xf32>
    %1 = vector.multi_reduction <add>, %0, %cst [1] : vector<16x32xf32> to vector<16xf32>
    %2 = vector.shape_cast %1 : vector<16xf32> to vector<16x1xf32>
    %cst_1 = arith.constant 3.200000e+01 : f32
    %3 = vector.broadcast %cst_1 : f32 to vector<16x1xf32>
    %4 = arith.divf %2, %3 : vector<16x1xf32>
    %5 = vector.broadcast %4 : vector<16x1xf32> to vector<16x32xf32>
    %6 = arith.subf %0, %5 : vector<16x32xf32>
    %7 = arith.mulf %6, %6 : vector<16x32xf32>
    %cst_2 = arith.constant dense<0.000000e+00> : vector<16xf32>
    %8 = vector.multi_reduction <add>, %7, %cst_2 [1] : vector<16x32xf32> to vector<16xf32>
    %9 = vector.shape_cast %8 : vector<16xf32> to vector<16x1xf32>
    %cst_3 = arith.constant 3.200000e+01 : f32
    %10 = vector.broadcast %cst_3 : f32 to vector<16x1xf32>
    %11 = arith.divf %9, %10 : vector<16x1xf32>
    %cst_4 = arith.constant 9.99999974E-6 : f32
    %12 = vector.broadcast %cst_4 : f32 to vector<16x1xf32>
    %13 = arith.addf %11, %12 : vector<16x1xf32>
    %14 = math.rsqrt %13 : vector<16x1xf32>
    %15 = vector.broadcast %14 : vector<16x1xf32> to vector<16x32xf32>
    %16 = arith.mulf %6, %15 : vector<16x32xf32>
    %c0_5 = arith.constant 0 : index
    %c0_6 = arith.constant 0 : index
    %17 = vector.load %arg3[%c0_5, %c0_6] : memref<1x32xf32, #tpu.memory_space<vmem>>, vector<1x32xf32>
    %18 = vector.broadcast %17 : vector<1x32xf32> to vector<16x32xf32>
    %19 = arith.mulf %16, %18 : vector<16x32xf32>
    %c0_7 = arith.constant 0 : index
    %c0_8 = arith.constant 0 : index
    %20 = vector.load %arg4[%c0_7, %c0_8] : memref<1x32xf32, #tpu.memory_space<vmem>>, vector<1x32xf32>
    %21 = vector.broadcast %20 : vector<1x32xf32> to vector<16x32xf32>
    %22 = arith.addf %19, %21 : vector<16x32xf32>
    %c0_9 = arith.constant 0 : index
    %c0_10 = arith.constant 0 : index
    %23 = vector.load %arg5[%c0_9, %c0_10] : memref<32x96xf32, #tpu.memory_space<vmem>>, vector<32x96xf32>
    %cst_11 = arith.constant dense<0.000000e+00> : vector<16x96xf32>
    %24 = tpu.matmul %22, %23, %cst_11 {dimension_numbers = #tpu.dot_dimension_numbers<[1], [0], [0], [1], [0, 0, 1, 1], [], []>} : vector<16x32xf32>, vector<32x96xf32>, vector<16x96xf32> -> vector<16x96xf32>
    %c0_12 = arith.constant 0 : index
    %c0_13 = arith.constant 0 : index
    %25 = vector.load %arg6[%c0_12, %c0_13] : memref<1x96xf32, #tpu.memory_space<vmem>>, vector<1x96xf32>
    %26 = vector.broadcast %25 : vector<1x96xf32> to vector<16x96xf32>
    %27 = arith.addf %24, %26 : vector<16x96xf32>
    %c0_14 = arith.constant 0 : index
    %c0_15 = arith.constant 0 : index
    %28 = vector.load %arg7[%c0_14, %c0_15] : memref<16x96xf32, #tpu.memory_space<vmem>>, vector<16x96xf32>
    tpu.vector_store %arg7[%c0_14, %c0_15], %27 {strides = array<i32>} : memref<16x96xf32, #tpu.memory_space<vmem>>, vector<16x96xf32>,
    return
  }
  func.func @transform_0(%arg0: i32, %arg1: i32) -> (i32, i32) {
    %c0_i32 = arith.constant 0 : i32
    %c0_i32_0 = arith.constant 0 : i32
    return %arg0, %c0_i32 : i32, i32
  }
  func.func @transform_1(%arg0: i32, %arg1: i32) -> (i32, i32) {
    %c0_i32 = arith.constant 0 : i32
    %c0_i32_0 = arith.constant 0 : i32
    %c0_i32_1 = arith.constant 0 : i32
    return %c0_i32, %c0_i32_0 : i32, i32
  }
  func.func @transform_2(%arg0: i32, %arg1: i32) -> (i32, i32) {
    %c0_i32 = arith.constant 0 : i32
    %c0_i32_0 = arith.constant 0 : i32
    %c0_i32_1 = arith.constant 0 : i32
    return %c0_i32, %c0_i32_0 : i32, i32
  }
  func.func @transform_3(%arg0: i32, %arg1: i32) -> (i32, i32) {
    %c0_i32 = arith.constant 0 : i32
    %c0_i32_0 = arith.constant 0 : i32
    return %c0_i32, %arg1 : i32, i32
  }
  func.func @transform_4(%arg0: i32, %arg1: i32) -> (i32, i32) {
    %c0_i32 = arith.constant 0 : i32
    %c0_i32_0 = arith.constant 0 : i32
    return %c0_i32, %arg1 : i32, i32
  }
  func.func @transform_5(%arg0: i32, %arg1: i32) -> (i32, i32) {
    %c0_i32 = arith.constant 0 : i32
    return %arg0, %arg1 : i32, i32
  }
}

module attributes {stable_mosaic.version = 11 : i64} {
  func.func @_causal_attn_kernel(%arg0: i32, %arg1: memref<8x8x8xf32, #tpu.memory_space<vmem>>, %arg2: memref<8x8x8xf32, #tpu.memory_space<vmem>>, %arg3: memref<8x8x8xf32, #tpu.memory_space<vmem>>, %arg4: memref<8x8x8xf32, #tpu.memory_space<vmem>>) attributes {dimension_semantics = [#tpu.dimension_semantics<parallel>], iteration_bounds = array<i64: 1>, scalar_prefetch = 0 : i64, scratch_operands = 0 : i64, tpu.core_type = #tpu.core_type<tc>, window_params = [{transform_indices = @transform_0, window_bounds = array<i64: 8, 8, 8>}, {transform_indices = @transform_1, window_bounds = array<i64: 8, 8, 8>}, {transform_indices = @transform_2, window_bounds = array<i64: 8, 8, 8>}, {transform_indices = @transform_3, window_bounds = array<i64: 8, 8, 8>}]} {
    %c0 = arith.constant 0 : index
    %c0_0 = arith.constant 0 : index
    %c0_1 = arith.constant 0 : index
    %0 = vector.load %arg1[%c0, %c0_0, %c0_1] : memref<8x8x8xf32, #tpu.memory_space<vmem>>, vector<8x8x8xf32>
    %c0_2 = arith.constant 0 : index
    %c0_3 = arith.constant 0 : index
    %c0_4 = arith.constant 0 : index
    %1 = vector.load %arg2[%c0_2, %c0_3, %c0_4] : memref<8x8x8xf32, #tpu.memory_space<vmem>>, vector<8x8x8xf32>
    %c0_5 = arith.constant 0 : index
    %c0_6 = arith.constant 0 : index
    %c0_7 = arith.constant 0 : index
    %2 = vector.load %arg3[%c0_5, %c0_6, %c0_7] : memref<8x8x8xf32, #tpu.memory_space<vmem>>, vector<8x8x8xf32>
    "tpu.trace_start"() <{level = 10 : i32, message = "bqd,bkd->bqk"}> : () -> ()
    %cst = arith.constant dense<0.000000e+00> : vector<8x8x8xf32>
    %3 = tpu.matmul %0, %1, %cst {dimension_numbers = #tpu.dot_dimension_numbers<[2], [2], [1], [1], [0, 0, 0, 1, 1, 1], [0], [0]>} : vector<8x8x8xf32>, vector<8x8x8xf32>, vector<8x8x8xf32> -> vector<8x8x8xf32>
    "tpu.trace_stop"() : () -> ()
    %cst_8 = arith.constant 0.353553385 : f32
    %4 = vector.broadcast %cst_8 : f32 to vector<8x8x8xf32>
    %5 = arith.mulf %3, %4 : vector<8x8x8xf32>
    %6 = tpu.iota {dimensions = array<i32: 1>} : vector<8x8x8xi32>
    %7 = tpu.iota {dimensions = array<i32: 2>} : vector<8x8x8xi32>
    %8 = arith.cmpi sle, %7, %6 : vector<8x8x8xi32>
    %cst_9 = arith.constant 0xFF800000 : f32
    %9 = vector.broadcast %cst_9 : f32 to vector<8x8x8xf32>
    %10 = arith.select %8, %5, %9 : vector<8x8x8xi1>, vector<8x8x8xf32>
    %cst_10 = arith.constant dense<0xFF800000> : vector<8x8xf32>
    %11 = vector.multi_reduction <maximumf>, %10, %cst_10 [2] : vector<8x8x8xf32> to vector<8x8xf32>
    %12 = vector.shape_cast %11 : vector<8x8xf32> to vector<8x8x1xf32>
    %13 = vector.broadcast %12 : vector<8x8x1xf32> to vector<8x8x8xf32>
    %14 = arith.subf %10, %13 : vector<8x8x8xf32>
    %15 = math.exp %14 : vector<8x8x8xf32>
    %cst_11 = arith.constant dense<0.000000e+00> : vector<8x8xf32>
    %16 = vector.multi_reduction <add>, %15, %cst_11 [2] : vector<8x8x8xf32> to vector<8x8xf32>
    %17 = vector.shape_cast %16 : vector<8x8xf32> to vector<8x8x1xf32>
    "tpu.trace_start"() <{level = 10 : i32, message = "bqk,bkd->bqd"}> : () -> ()
    %cst_12 = arith.constant dense<0.000000e+00> : vector<8x8x8xf32>
    %18 = tpu.matmul %15, %2, %cst_12 {dimension_numbers = #tpu.dot_dimension_numbers<[2], [1], [1], [2], [0, 0, 0, 1, 1, 2], [0], [0]>} : vector<8x8x8xf32>, vector<8x8x8xf32>, vector<8x8x8xf32> -> vector<8x8x8xf32>
    "tpu.trace_stop"() : () -> ()
    %19 = vector.broadcast %17 : vector<8x8x1xf32> to vector<8x8x8xf32>
    %20 = arith.divf %18, %19 : vector<8x8x8xf32>
    %c0_13 = arith.constant 0 : index
    %c0_14 = arith.constant 0 : index
    %c0_15 = arith.constant 0 : index
    %21 = vector.load %arg4[%c0_13, %c0_14, %c0_15] : memref<8x8x8xf32, #tpu.memory_space<vmem>>, vector<8x8x8xf32>
    tpu.vector_store %arg4[%c0_13, %c0_14, %c0_15], %20 {strides = array<i32>} : memref<8x8x8xf32, #tpu.memory_space<vmem>>, vector<8x8x8xf32>,
    return
  }
  func.func @transform_0(%arg0: i32) -> (i32, i32, i32) {
    %c0_i32 = arith.constant 0 : i32
    %c0_i32_0 = arith.constant 0 : i32
    %c0_i32_1 = arith.constant 0 : i32
    return %arg0, %c0_i32, %c0_i32_0 : i32, i32, i32
  }
  func.func @transform_1(%arg0: i32) -> (i32, i32, i32) {
    %c0_i32 = arith.constant 0 : i32
    %c0_i32_0 = arith.constant 0 : i32
    %c0_i32_1 = arith.constant 0 : i32
    return %arg0, %c0_i32, %c0_i32_0 : i32, i32, i32
  }
  func.func @transform_2(%arg0: i32) -> (i32, i32, i32) {
    %c0_i32 = arith.constant 0 : i32
    %c0_i32_0 = arith.constant 0 : i32
    %c0_i32_1 = arith.constant 0 : i32
    return %arg0, %c0_i32, %c0_i32_0 : i32, i32, i32
  }
  func.func @transform_3(%arg0: i32) -> (i32, i32, i32) {
    %c0_i32 = arith.constant 0 : i32
    %c0_i32_0 = arith.constant 0 : i32
    %c0_i32_1 = arith.constant 0 : i32
    return %arg0, %c0_i32, %c0_i32_0 : i32, i32, i32
  }
}

module attributes {stable_mosaic.version = 11 : i64} {
  func.func @_linear_kernel(%arg0: i32, %arg1: i32, %arg2: i32, %arg3: memref<16x32xf32, #tpu.memory_space<vmem>>, %arg4: memref<32x32xf32, #tpu.memory_space<vmem>>, %arg5: memref<1x32xf32, #tpu.memory_space<vmem>>, %arg6: memref<16x32xf32, #tpu.memory_space<vmem>>, %arg7: memref<16x32xf32, #tpu.memory_space<vmem>>, %arg8: memref<16x32xf32, #tpu.memory_space<vmem>>) attributes {dimension_semantics = [#tpu.dimension_semantics<parallel>, #tpu.dimension_semantics<parallel>, #tpu.dimension_semantics<arbitrary>], iteration_bounds = array<i64: 1, 1, 1>, scalar_prefetch = 0 : i64, scratch_operands = 1 : i64, tpu.core_type = #tpu.core_type<tc>, window_params = [{transform_indices = @transform_0, window_bounds = array<i64: 16, 32>}, {transform_indices = @transform_1, window_bounds = array<i64: 32, 32>}, {transform_indices = @transform_2, window_bounds = array<i64: 1, 32>}, {transform_indices = @transform_3, window_bounds = array<i64: 16, 32>}, {transform_indices = @transform_4, window_bounds = array<i64: 16, 32>}]} {
    %c0_i32 = arith.constant 0 : i32
    %0 = arith.cmpi eq, %arg2, %c0_i32 : i32
    %1 = arith.extui %0 : i1 to i32
    %c0_i32_0 = arith.constant 0 : i32
    %2 = arith.cmpi ne, %1, %c0_i32_0 : i32
    scf.if %2 {
      %cst_10 = arith.constant 0.000000e+00 : f32
      %12 = vector.broadcast %cst_10 : f32 to vector<16x32xf32>
      %c0_11 = arith.constant 0 : index
      %c0_12 = arith.constant 0 : index
      %13 = vector.load %arg8[%c0_11, %c0_12] : memref<16x32xf32, #tpu.memory_space<vmem>>, vector<16x32xf32>
      tpu.vector_store %arg8[%c0_11, %c0_12], %12 {strides = array<i32>} : memref<16x32xf32, #tpu.memory_space<vmem>>, vector<16x32xf32>,
    } else {
    }
    %c0 = arith.constant 0 : index
    %c0_1 = arith.constant 0 : index
    %3 = vector.load %arg8[%c0, %c0_1] : memref<16x32xf32, #tpu.memory_space<vmem>>, vector<16x32xf32>
    %c0_2 = arith.constant 0 : index
    %c0_3 = arith.constant 0 : index
    %4 = vector.load %arg3[%c0_2, %c0_3] : memref<16x32xf32, #tpu.memory_space<vmem>>, vector<16x32xf32>
    %c0_4 = arith.constant 0 : index
    %c0_5 = arith.constant 0 : index
    %5 = vector.load %arg4[%c0_4, %c0_5] : memref<32x32xf32, #tpu.memory_space<vmem>>, vector<32x32xf32>
    %cst = arith.constant dense<0.000000e+00> : vector<16x32xf32>
    %6 = tpu.matmul %4, %5, %cst {dimension_numbers = #tpu.dot_dimension_numbers<[1], [0], [0], [1], [0, 0, 1, 1], [], []>} : vector<16x32xf32>, vector<32x32xf32>, vector<16x32xf32> -> vector<16x32xf32>
    %7 = arith.addf %3, %6 : vector<16x32xf32>
    %c0_6 = arith.constant 0 : index
    %c0_7 = arith.constant 0 : index
    %8 = vector.load %arg8[%c0_6, %c0_7] : memref<16x32xf32, #tpu.memory_space<vmem>>, vector<16x32xf32>
    tpu.vector_store %arg8[%c0_6, %c0_7], %7 {strides = array<i32>} : memref<16x32xf32, #tpu.memory_space<vmem>>, vector<16x32xf32>,
    %c0_i32_8 = arith.constant 0 : i32
    %9 = arith.cmpi eq, %arg2, %c0_i32_8 : i32
    %10 = arith.extui %9 : i1 to i32
    %c0_i32_9 = arith.constant 0 : i32
    %11 = arith.cmpi ne, %10, %c0_i32_9 : i32
    scf.if %11 {
      %c0_10 = arith.constant 0 : index
      %c0_11 = arith.constant 0 : index
      %12 = vector.load %arg8[%c0_10, %c0_11] : memref<16x32xf32, #tpu.memory_space<vmem>>, vector<16x32xf32>
      %c0_12 = arith.constant 0 : index
      %c0_13 = arith.constant 0 : index
      %13 = vector.load %arg5[%c0_12, %c0_13] : memref<1x32xf32, #tpu.memory_space<vmem>>, vector<1x32xf32>
      %14 = vector.broadcast %13 : vector<1x32xf32> to vector<16x32xf32>
      %15 = arith.addf %12, %14 : vector<16x32xf32>
      %c0_14 = arith.constant 0 : index
      %c0_15 = arith.constant 0 : index
      %16 = vector.load %arg6[%c0_14, %c0_15] : memref<16x32xf32, #tpu.memory_space<vmem>>, vector<16x32xf32>
      %17 = arith.addf %15, %16 : vector<16x32xf32>
      %c0_16 = arith.constant 0 : index
      %c0_17 = arith.constant 0 : index
      %18 = vector.load %arg7[%c0_16, %c0_17] : memref<16x32xf32, #tpu.memory_space<vmem>>, vector<16x32xf32>
      tpu.vector_store %arg7[%c0_16, %c0_17], %17 {strides = array<i32>} : memref<16x32xf32, #tpu.memory_space<vmem>>, vector<16x32xf32>,
    } else {
    }
    return
  }
  func.func @transform_0(%arg0: i32, %arg1: i32, %arg2: i32) -> (i32, i32) {
    %c0_i32 = arith.constant 0 : i32
    return %arg0, %arg2 : i32, i32
  }
  func.func @transform_1(%arg0: i32, %arg1: i32, %arg2: i32) -> (i32, i32) {
    %c0_i32 = arith.constant 0 : i32
    return %arg2, %arg1 : i32, i32
  }
  func.func @transform_2(%arg0: i32, %arg1: i32, %arg2: i32) -> (i32, i32) {
    %c0_i32 = arith.constant 0 : i32
    %c0_i32_0 = arith.constant 0 : i32
    return %c0_i32, %arg1 : i32, i32
  }
  func.func @transform_3(%arg0: i32, %arg1: i32, %arg2: i32) -> (i32, i32) {
    %c0_i32 = arith.constant 0 : i32
    return %arg0, %arg1 : i32, i32
  }
  func.func @transform_4(%arg0: i32, %arg1: i32, %arg2: i32) -> (i32, i32) {
    %c0_i32 = arith.constant 0 : i32
    return %arg0, %arg1 : i32, i32
  }
}

module attributes {stable_mosaic.version = 11 : i64} {
  func.func @_ln_mlp_kernel(%arg0: i32, %arg1: memref<16x32xf32, #tpu.memory_space<vmem>>, %arg2: memref<1x32xf32, #tpu.memory_space<vmem>>, %arg3: memref<1x32xf32, #tpu.memory_space<vmem>>, %arg4: memref<32x128xf32, #tpu.memory_space<vmem>>, %arg5: memref<1x128xf32, #tpu.memory_space<vmem>>, %arg6: memref<128x32xf32, #tpu.memory_space<vmem>>, %arg7: memref<1x32xf32, #tpu.memory_space<vmem>>, %arg8: memref<16x32xf32, #tpu.memory_space<vmem>>) attributes {dimension_semantics = [#tpu.dimension_semantics<parallel>], iteration_bounds = array<i64: 1>, scalar_prefetch = 0 : i64, scratch_operands = 0 : i64, tpu.core_type = #tpu.core_type<tc>, window_params = [{transform_indices = @transform_0, window_bounds = array<i64: 16, 32>}, {pipeline_mode = #tpu.pipeline_mode<synchronous>, transform_indices = @transform_1, window_bounds = array<i64: 1, 32>}, {pipeline_mode = #tpu.pipeline_mode<synchronous>, transform_indices = @transform_2, window_bounds = array<i64: 1, 32>}, {pipeline_mode = #tpu.pipeline_mode<synchronous>, transform_indices = @transform_3, window_bounds = array<i64: 32, 128>}, {pipeline_mode = #tpu.pipeline_mode<synchronous>, transform_indices = @transform_4, window_bounds = array<i64: 1, 128>}, {pipeline_mode = #tpu.pipeline_mode<synchronous>, transform_indices = @transform_5, window_bounds = array<i64: 128, 32>}, {pipeline_mode = #tpu.pipeline_mode<synchronous>, transform_indices = @transform_6, window_bounds = array<i64: 1, 32>}, {transform_indices = @transform_7, window_bounds = array<i64: 16, 32>}]} {
    %c0 = arith.constant 0 : index
    %c0_0 = arith.constant 0 : index
    %0 = vector.load %arg1[%c0, %c0_0] : memref<16x32xf32, #tpu.memory_space<vmem>>, vector<16x32xf32>
    %cst = arith.constant dense<0.000000e+00> : vector<16xf32>
    %1 = vector.multi_reduction <add>, %0, %cst [1] : vector<16x32xf32> to vector<16xf32>
    %2 = vector.shape_cast %1 : vector<16xf32> to vector<16x1xf32>
    %cst_1 = arith.constant 3.200000e+01 : f32
    %3 = vector.broadcast %cst_1 : f32 to vector<16x1xf32>
    %4 = arith.divf %2, %3 : vector<16x1xf32>
    %5 = vector.broadcast %4 : vector<16x1xf32> to vector<16x32xf32>
    %6 = arith.subf %0, %5 : vector<16x32xf32>
    %7 = arith.mulf %6, %6 : vector<16x32xf32>
    %cst_2 = arith.constant dense<0.000000e+00> : vector<16xf32>
    %8 = vector.multi_reduction <add>, %7, %cst_2 [1] : vector<16x32xf32> to vector<16xf32>
    %9 = vector.shape_cast %8 : vector<16xf32> to vector<16x1xf32>
    %cst_3 = arith.constant 3.200000e+01 : f32
    %10 = vector.broadcast %cst_3 : f32 to vector<16x1xf32>
    %11 = arith.divf %9, %10 : vector<16x1xf32>
    %cst_4 = arith.constant 9.99999974E-6 : f32
    %12 = vector.broadcast %cst_4 : f32 to vector<16x1xf32>
    %13 = arith.addf %11, %12 : vector<16x1xf32>
    %14 = math.rsqrt %13 : vector<16x1xf32>
    %15 = vector.broadcast %14 : vector<16x1xf32> to vector<16x32xf32>
    %16 = arith.mulf %6, %15 : vector<16x32xf32>
    %c0_5 = arith.constant 0 : index
    %c0_6 = arith.constant 0 : index
    %17 = vector.load %arg2[%c0_5, %c0_6] : memref<1x32xf32, #tpu.memory_space<vmem>>, vector<1x32xf32>
    %18 = vector.broadcast %17 : vector<1x32xf32> to vector<16x32xf32>
    %19 = arith.mulf %16, %18 : vector<16x32xf32>
    %c0_7 = arith.constant 0 : index
    %c0_8 = arith.constant 0 : index
    %20 = vector.load %arg3[%c0_7, %c0_8] : memref<1x32xf32, #tpu.memory_space<vmem>>, vector<1x32xf32>
    %21 = vector.broadcast %20 : vector<1x32xf32> to vector<16x32xf32>
    %22 = arith.addf %19, %21 : vector<16x32xf32>
    %c0_9 = arith.constant 0 : index
    %c0_10 = arith.constant 0 : index
    %23 = vector.load %arg4[%c0_9, %c0_10] : memref<32x128xf32, #tpu.memory_space<vmem>>, vector<32x128xf32>
    %cst_11 = arith.constant dense<0.000000e+00> : vector<16x128xf32>
    %24 = tpu.matmul %22, %23, %cst_11 {dimension_numbers = #tpu.dot_dimension_numbers<[1], [0], [0], [1], [0, 0, 1, 1], [], []>} : vector<16x32xf32>, vector<32x128xf32>, vector<16x128xf32> -> vector<16x128xf32>
    %c0_12 = arith.constant 0 : index
    %c0_13 = arith.constant 0 : index
    %25 = vector.load %arg5[%c0_12, %c0_13] : memref<1x128xf32, #tpu.memory_space<vmem>>, vector<1x128xf32>
    %26 = vector.broadcast %25 : vector<1x128xf32> to vector<16x128xf32>
    %27 = arith.addf %24, %26 : vector<16x128xf32>
    %cst_14 = arith.constant 5.000000e-01 : f32
    %28 = vector.broadcast %cst_14 : f32 to vector<16x128xf32>
    %29 = arith.mulf %28, %27 : vector<16x128xf32>
    %cst_15 = arith.constant 0.707106769 : f32
    %30 = vector.broadcast %cst_15 : f32 to vector<16x128xf32>
    %31 = arith.mulf %27, %30 : vector<16x128xf32>
    %32 = math.absf %31 : vector<16x128xf32>
    %cst_16 = arith.constant 0.327591091 : f32
    %33 = vector.broadcast %cst_16 : f32 to vector<16x128xf32>
    %34 = arith.mulf %33, %32 : vector<16x128xf32>
    %cst_17 = arith.constant 1.000000e+00 : f32
    %35 = vector.broadcast %cst_17 : f32 to vector<16x128xf32>
    %36 = arith.addf %35, %34 : vector<16x128xf32>
    %cst_18 = arith.constant 1.000000e+00 : f32
    %37 = vector.broadcast %cst_18 : f32 to vector<16x128xf32>
    %38 = arith.divf %37, %36 : vector<16x128xf32>
    %cst_19 = arith.constant 1.06140542 : f32
    %39 = vector.broadcast %cst_19 : f32 to vector<16x128xf32>
    %40 = arith.mulf %39, %38 : vector<16x128xf32>
    %cst_20 = arith.constant -1.45315206 : f32
    %41 = vector.broadcast %cst_20 : f32 to vector<16x128xf32>
    %42 = arith.addf %40, %41 : vector<16x128xf32>
    %43 = arith.mulf %42, %38 : vector<16x128xf32>
    %cst_21 = arith.constant 1.42141378 : f32
    %44 = vector.broadcast %cst_21 : f32 to vector<16x128xf32>
    %45 = arith.addf %43, %44 : vector<16x128xf32>
    %46 = arith.mulf %45, %38 : vector<16x128xf32>
    %cst_22 = arith.constant -0.284496725 : f32
    %47 = vector.broadcast %cst_22 : f32 to vector<16x128xf32>
    %48 = arith.addf %46, %47 : vector<16x128xf32>
    %49 = arith.mulf %48, %38 : vector<16x128xf32>
    %cst_23 = arith.constant 0.254829586 : f32
    %50 = vector.broadcast %cst_23 : f32 to vector<16x128xf32>
    %51 = arith.addf %49, %50 : vector<16x128xf32>
    %52 = arith.mulf %51, %38 : vector<16x128xf32>
    %cst_24 = arith.constant 0.000000e+00 : f32
    %53 = vector.broadcast %cst_24 : f32 to vector<16x128xf32>
    %54 = arith.subf %53, %32 : vector<16x128xf32>
    %55 = arith.mulf %54, %32 : vector<16x128xf32>
    %56 = math.exp %55 : vector<16x128xf32>
    %57 = arith.mulf %52, %56 : vector<16x128xf32>
    %cst_25 = arith.constant 1.000000e+00 : f32
    %58 = vector.broadcast %cst_25 : f32 to vector<16x128xf32>
    %59 = arith.subf %58, %57 : vector<16x128xf32>
    %cst_26 = arith.constant 0.000000e+00 : f32
    %60 = vector.broadcast %cst_26 : f32 to vector<16x128xf32>
    %61 = arith.cmpf olt, %31, %60 : vector<16x128xf32>
    %cst_27 = arith.constant 0.000000e+00 : f32
    %62 = vector.broadcast %cst_27 : f32 to vector<16x128xf32>
    %63 = arith.subf %62, %59 : vector<16x128xf32>
    %64 = arith.select %61, %63, %59 : vector<16x128xi1>, vector<16x128xf32>
    %cst_28 = arith.constant 1.000000e+00 : f32
    %65 = vector.broadcast %cst_28 : f32 to vector<16x128xf32>
    %66 = arith.addf %65, %64 : vector<16x128xf32>
    %67 = arith.mulf %29, %66 : vector<16x128xf32>
    %c0_29 = arith.constant 0 : index
    %c0_30 = arith.constant 0 : index
    %68 = vector.load %arg6[%c0_29, %c0_30] : memref<128x32xf32, #tpu.memory_space<vmem>>, vector<128x32xf32>
    %cst_31 = arith.constant dense<0.000000e+00> : vector<16x32xf32>
    %69 = tpu.matmul %67, %68, %cst_31 {dimension_numbers = #tpu.dot_dimension_numbers<[1], [0], [0], [1], [0, 0, 1, 1], [], []>} : vector<16x128xf32>, vector<128x32xf32>, vector<16x32xf32> -> vector<16x32xf32>
    %c0_32 = arith.constant 0 : index
    %c0_33 = arith.constant 0 : index
    %70 = vector.load %arg7[%c0_32, %c0_33] : memref<1x32xf32, #tpu.memory_space<vmem>>, vector<1x32xf32>
    %71 = vector.broadcast %70 : vector<1x32xf32> to vector<16x32xf32>
    %72 = arith.addf %69, %71 : vector<16x32xf32>
    %73 = arith.addf %72, %0 : vector<16x32xf32>
    %c0_34 = arith.constant 0 : index
    %c0_35 = arith.constant 0 : index
    %74 = vector.load %arg8[%c0_34, %c0_35] : memref<16x32xf32, #tpu.memory_space<vmem>>, vector<16x32xf32>
    tpu.vector_store %arg8[%c0_34, %c0_35], %73 {strides = array<i32>} : memref<16x32xf32, #tpu.memory_space<vmem>>, vector<16x32xf32>,
    return
  }
  func.func @transform_0(%arg0: i32) -> (i32, i32) {
    %c0_i32 = arith.constant 0 : i32
    %c0_i32_0 = arith.constant 0 : i32
    return %arg0, %c0_i32 : i32, i32
  }
  func.func @transform_1(%arg0: i32) -> (i32, i32) {
    %c0_i32 = arith.constant 0 : i32
    %c0_i32_0 = arith.constant 0 : i32
    %c0_i32_1 = arith.constant 0 : i32
    return %c0_i32, %c0_i32_0 : i32, i32
  }
  func.func @transform_2(%arg0: i32) -> (i32, i32) {
    %c0_i32 = arith.constant 0 : i32
    %c0_i32_0 = arith.constant 0 : i32
    %c0_i32_1 = arith.constant 0 : i32
    return %c0_i32, %c0_i32_0 : i32, i32
  }
  func.func @transform_3(%arg0: i32) -> (i32, i32) {
    %c0_i32 = arith.constant 0 : i32
    %c0_i32_0 = arith.constant 0 : i32
    %c0_i32_1 = arith.constant 0 : i32
    return %c0_i32, %c0_i32_0 : i32, i32
  }
  func.func @transform_4(%arg0: i32) -> (i32, i32) {
    %c0_i32 = arith.constant 0 : i32
    %c0_i32_0 = arith.constant 0 : i32
    %c0_i32_1 = arith.constant 0 : i32
    return %c0_i32, %c0_i32_0 : i32, i32
  }
  func.func @transform_5(%arg0: i32) -> (i32, i32) {
    %c0_i32 = arith.constant 0 : i32
    %c0_i32_0 = arith.constant 0 : i32
    %c0_i32_1 = arith.constant 0 : i32
    return %c0_i32, %c0_i32_0 : i32, i32
  }
  func.func @transform_6(%arg0: i32) -> (i32, i32) {
    %c0_i32 = arith.constant 0 : i32
    %c0_i32_0 = arith.constant 0 : i32
    %c0_i32_1 = arith.constant 0 : i32
    return %c0_i32, %c0_i32_0 : i32, i32
  }
  func.func @transform_7(%arg0: i32) -> (i32, i32) {
    %c0_i32 = arith.constant 0 : i32
    %c0_i32_0 = arith.constant 0 : i32
    return %arg0, %c0_i32 : i32, i32
  }
}

</mosaic_0001>

<bundles_post_ra>
// kernel: block_forward.6
= control target key start
LH: loop header
LB: loop body
LE: loop exit
PB: predicated region body
PF: predicated region fallthrough
CT: control target
= control target key end

     0   :  { %vm21_vm0 = vcmask 261120   ;;  %v171_v3 = vmov 0.0   ;;  %s238_s1 = inlined_call_operand.vmem [shape: f32[32,32], index: 1, kind: input, shape index: {}]   ;;  %s239_s0 = inlined_call_operand.vmem [shape: f32[16,32], index: 0, kind: input, shape index: {}]   ;;  %s240_s2 = inlined_call_operand.vmem [shape: f32[1,32], index: 2, kind: input, shape index: {}]   ;;  %s241_s3 = inlined_call_operand.vmem [shape: f32[16,32], index: 3, kind: input, shape index: {}]   ;;  %s242_s4 = inlined_call_operand.vmem [shape: f32[16,32], index: 4, kind: output, shape index: {}]  }
   0x1   :  { %v28_v0 = vld [vmem:[%s238_s1] sm:$0xff]  ;;  %v29_v1 = vld [vmem:[%s238_s1 + $0x8] sm:$0xff]  ;;  %v30_v2 = vld [vmem:[%s238_s1 + $0x10] sm:$0xff]  ;;  %23 = vst.msk [vmem:[#allocation2 + $0x8] sm:$0xff] %vm21_vm0, %v171_v3 }
   0x2   :  { %22 = vst.msk [vmem:[#allocation2] sm:$0xff] %vm21_vm0, %v171_v3  ;;  %v162_v4 = vpack.c.bf16 %v29_v1, %v28_v0  ;;  %v31_v5 = vld [vmem:[%s238_s1 + $0x18] sm:$0xff]  ;;  %v26_v6 = vld [vmem:[%s239_s0] sm:$0xff]  ;;  %v27_v8 = vld [vmem:[%s239_s0 + $0x8] sm:$0xff] }
   0x3   :  { %v166_v7 = vpack.c.bf16 %v31_v5, %v30_v2  ;;  %159 = vmatprep.mubr.msk.f32.mxu0 %vm21_vm0, %v26_v6  ;;  %v144_v15 = vld [vmem:[%s240_s2] ss:$0 sm:$0xff]  ;;  %v133_v17 = vld [vmem:[%s241_s3 + $0x8] sm:$0xff] }
   0x4   :  { %163 = vmatprep.subr.bf16.mxu0 %v162_v4  ;;  %v132_v20 = vld [vmem:[%s241_s3] sm:$0xff] }
   0x5   :  { %165 = vmatpush3.bf16.msra.mxu0 %v162_v4 }
   0x6   :  { %167 = vmatprep.subr.bf16.mxu0 %v166_v7 }
   0x8   :  { %v25_v9 = vld [vmem:[#allocation2 + $0x8] sm:$0xff] }
   0x9   :  { %169 = vmatpush3.bf16.msra.mxu0 %v166_v7  ;;  %v24_v10 = vld [vmem:[#allocation2] sm:$0xff] }
   0xc   :  { %160 = vmatmul.mubr.msk.f32.vlgmr.msra.gmra.mrb[0].mxu0 %vm21_vm0, %v27_v8 }
  0xdf   :  { %v161_v11 = vpop.f32.mrb[0].mxu0 }
  0xe0   :  { %v115_v12 = vadd.f32 %v161_v11, %v25_v9  ;;  %v105_v13 = vpop.f32.mrb[1].mxu0 }
  0xe1   :  { %v114_v14 = vadd.f32 %v105_v13, %v24_v10 }
  0xe2   :  { %117 = vst.msk [vmem:[#allocation2 + $0x8] sm:$0xff] %vm21_vm0, %v115_v12 }
  0xe3   :  { %116 = vst.msk [vmem:[#allocation2] sm:$0xff] %vm21_vm0, %v114_v14 }
  0xe9   :  { %v122_v16 = vld [vmem:[#allocation2 + $0x8] sm:$0xff] }
  0xea   :  { %v131_v18 = vadd.f32 %v144_v15, %v122_v16  ;;  %v121_v19 = vld [vmem:[#allocation2] sm:$0xff] }
  0xeb   :  { %v130_v21 = vadd.f32 %v144_v15, %v121_v19 }
  0xec   :  { %v135_v22 = vadd.f32 %v133_v17, %v131_v18 }
  0xed   :  { %v134_v23 = vadd.f32 %v132_v20, %v130_v21 }
  0xee   :  { %137 = vst.msk [vmem:[%s242_s4 + $0x8] sm:$0xff] %vm21_vm0, %v135_v22 }
  0xef   :  { %136 = vst.msk [vmem:[%s242_s4] sm:$0xff] %vm21_vm0, %v134_v23 }

// kernel: block_forward.4
= control target key start
LH: loop header
LB: loop body
LE: loop exit
PB: predicated region body
PF: predicated region fallthrough
CT: control target
= control target key end

     0   :  { %10 = vsyncpa [#allocation3], 0  ;;  %s243_s18 = smov [#allocation2]   ;;  %s315_s0 = inlined_call_operand.vmem [shape: f32[16,32], index: 0, kind: input, shape index: {}]   ;;  %s316_s1 = inlined_call_operand.vmem [shape: f32[1,32], index: 1, kind: input, shape index: {}]   ;;  %s317_s2 = inlined_call_operand.vmem [shape: f32[1,32], index: 2, kind: input, shape index: {}]   ;;  %s318_s3 = inlined_call_operand.hbm [shape: f32[32,96], index: 3, kind: input, shape index: {}]   ;;  %s319_s4 = inlined_call_operand.vmem [shape: f32[1,96], index: 4, kind: input, shape index: {}]   ;;  %s320_s5 = inlined_call_operand.vmem [shape: f32[16,96], index: 5, kind: output, shape index: {}]  }
   0x1   :  { %s22_s19 = sshll.u32 %s243_s18, 4  ;;  %s219_s22 = scalar_lea.hbm %s318_s3, 512  ;;  %s23_s19 = int_to_ptr.vmem [resolvable:$true] %s22_s19 }
   0x2   :  { %p220_p0 = scmp.ne.s32.totalorder %s318_s3, %s219_s22  ;;  %p223_p1 = scmp.lt.u32.totalorder %s219_s22, %s318_s3 }
   0x4   :  { %p225_p2 = pnand %p223_p1, %p220_p0 }
   0x6   :  { %228 = shalt.err (!%p225_p2)
}
   0x7   :  { %s229_s27 = scalar_lea.vmem %s23_s19, 512  ;;  %p234_p4 = scmp.lt.s32.totalorder %s23_s19, %s23_s19 }
   0x8   :  { %p230_p3 = scmp.ne.s32.totalorder %s23_s19, %s229_s27  ;;  %p235_p5 = scmp.lt.s32.totalorder %s229_s27, %s229_s27 }
   0xa   :  { %p236_p6 = por %p235_p5, %p234_p4 }
   0xc   :  { %p237_p7 = pnand %p236_p6, %p230_p3 }
   0xe   :  { %240 = shalt.err (!%p237_p7)
}
   0xf   :  { %s244_s28 = smov 128   ;;  %s245_s29 = smov 8  }
  0x10   :  { %28 = dma.hbm_to_vmem [thread:$0]  %s318_s3, 512, %s23_s19, [#allocation3], %s244_s28, %s244_s28, %s245_s29  }
  0x11   :  { %241 = dma.done.wait [#allocation3], 512  }
  0x12   :  { %242 = vsyncadd [#allocation3], 4294966784  ;;  %vm36_vm0 = vcmask 261120   ;;  %v34_v0 = vld [vmem:[%s315_s0] sm:$0xff]  ;;  %v35_v1 = vld [vmem:[%s315_s0 + $0x8] sm:$0xff]  ;;  %vm174_vm1 = vcmask 785408  }
  0x13   :  { %v37_v2 = vsel %vm36_vm0, %v34_v0, 0.0  ;;  %v40_v3 = vsel %vm36_vm0, %v35_v1, 0.0  ;;  %v82_v14 = vld [vmem:[#allocation2] sm:$0xff]  ;;  %v83_v15 = vld [vmem:[#allocation2 + $0x8] sm:$0xff]  ;;  %v84_v16 = vld [vmem:[#allocation2 + $0x10] sm:$0xff] }
  0x14   :  { %38 = vadd.xlane.f32.xlu0 %v37_v2  ;;  %v204_v17 = vpack.c.bf16 %v83_v15, %v82_v14  ;;  %v85_v18 = vld [vmem:[#allocation2 + $0x18] sm:$0xff]  ;;  %v182_v27 = vld [vmem:[%s316_s1] ss:$0 sm:$0xff] }
  0x15   :  { %v208_v19 = vpack.c.bf16 %v85_v18, %v84_v16  ;;  %v183_v29 = vld [vmem:[%s317_s2] ss:$0 sm:$0xff] }
  0x16   :  { %205 = vmatprep.subr.bf16.mxu0 %v204_v17  ;;  %v184_v36 = vld [vmem:[%s319_s4] ss:$0 sm:$0xff] }
  0x17   :  { %207 = vmatpush3.bf16.msra.mxu0 %v204_v17 }
  0x18   :  { %41 = vadd.xlane.f32.xlu0 %v40_v3  ;;  %209 = vmatprep.subr.bf16.mxu0 %v208_v19 }
  0x1b   :  { %211 = vmatpush3.bf16.msra.mxu0 %v208_v19 }
  0xa1   :  { %v39_v4 = vpop.xlane.xlu0 %38 }
  0xa2   :  { %v44_v5 = vmul.f32 0.03125, %v39_v4 }
  0xa4   :  { %v46_v6 = vsub.f32 %v34_v0, %v44_v5 }
  0xa5   :  { %v42_v7 = vpop.xlane.xlu0 %41 }
  0xa6   :  { %v45_v8 = vmul.f32 0.03125, %v42_v7  ;;  %v48_v9 = vmul.f32 %v46_v6, %v46_v6 }
  0xa8   :  { %v47_v10 = vsub.f32 %v35_v1, %v45_v8  ;;  %v50_v11 = vsel %vm36_vm0, %v48_v9, 0.0 }
  0xa9   :  { %51 = vadd.xlane.f32.xlu1 %v50_v11 }
  0xaa   :  { %v49_v12 = vmul.f32 %v47_v10, %v47_v10 }
  0xac   :  { %v53_v13 = vsel %vm36_vm0, %v49_v12, 0.0 }
  0xad   :  { %54 = vadd.xlane.f32.xlu1 %v53_v13 }
 0x136   :  { %v52_v20 = vpop.xlane.xlu1 %51 }
 0x137   :  { %v56_v21 = vmul.f32 0.03125, %v52_v20 }
 0x139   :  { %v58_v22 = vadd.f32 1e-05, %v56_v21 }
 0x13a   :  { %v55_v23 = vpop.xlane.xlu1 %54 }
 0x13b   :  { %215 = vrsqrt.f32 %v58_v22  ;;  %v57_v24 = vmul.f32 0.03125, %v55_v23 }
 0x13d   :  { %v59_v25 = vadd.f32 1e-05, %v57_v24 }
 0x13f   :  { %217 = vrsqrt.f32 %v59_v25 }
 0x145   :  { %v216_v26 = vpop.eup %215 }
 0x146   :  { %v62_v28 = vmul.f32 %v216_v26, %v46_v6 }
 0x148   :  { %v71_v30 = vmul.f32 %v182_v27, %v62_v28 }
 0x149   :  { %v218_v31 = vpop.eup %217 }
 0x14a   :  { %v63_v32 = vmul.f32 %v218_v31, %v47_v10  ;;  %v80_v33 = vadd.f32 %v183_v29, %v71_v30 }
 0x14c   :  { %v72_v34 = vmul.f32 %v182_v27, %v63_v32  ;;  %201 = vmatprep.mubr.msk.f32.mxu0 %vm36_vm0, %v80_v33 }
 0x14e   :  { %v81_v35 = vadd.f32 %v183_v29, %v72_v34 }
 0x150   :  { %202 = vmatmul.mubr.msk.f32.vlgmr.msra.gmra.mrb[0].mxu0 %vm36_vm0, %v81_v35 }
 0x223   :  { %v203_v37 = vpop.f32.mrb[0].mxu0 }
 0x224   :  { %v171_v38 = vadd.f32 %v203_v37, %v184_v36  ;;  %v165_v39 = vpop.f32.mrb[1].mxu0 }
 0x225   :  { %v166_v40 = vadd.f32 %v184_v36, %v165_v39 }
 0x226   :  { %176 = vst.msk [vmem:[%s320_s5 + $0x8] sm:$0xff] %vm174_vm1, %v171_v38 }
 0x227   :  { %175 = vst.msk [vmem:[%s320_s5] sm:$0xff] %vm174_vm1, %v166_v40 }
 0x228   :  { %181 = vsyncpa [#allocation3], 1 }

// kernel: block_forward.7
= control target key start
LH: loop header
LB: loop body
LE: loop exit
PB: predicated region body
PF: predicated region fallthrough
CT: control target
= control target key end

     0   :  { %vm29_vm0 = vcmask 261120   ;;  %s645_s0 = inlined_call_operand.vmem [shape: f32[16,32], index: 0, kind: input, shape index: {}]   ;;  %s646_s1 = inlined_call_operand.vmem [shape: f32[1,32], index: 1, kind: input, shape index: {}]   ;;  %s647_s2 = inlined_call_operand.vmem [shape: f32[1,32], index: 2, kind: input, shape index: {}]   ;;  %s648_s3 = inlined_call_operand.vmem [shape: f32[32,128], index: 3, kind: input, shape index: {}]   ;;  %s649_s4 = inlined_call_operand.vmem [shape: f32[1,128], index: 4, kind: input, shape index: {}]   ;;  %s650_s5 = inlined_call_operand.vmem [shape: f32[128,32], index: 5, kind: input, shape index: {}]   ;;  %s651_s6 = inlined_call_operand.vmem [shape: f32[1,32], index: 6, kind: input, shape index: {}]   ;;  %s652_s7 = inlined_call_operand.hbm [shape: f32[16,32], index: 7, kind: output, shape index: {}]  }
   0x1   :  { %v540_v0 = vld [vmem:[%s645_s0] sm:$0xff]  ;;  %v545_v1 = vld [vmem:[%s645_s0 + $0x8] sm:$0xff] }
   0x2   :  { %12 = vsyncpa [#allocation3], 0  ;;  %v30_v2 = vsel %vm29_vm0, %v540_v0, 0.0  ;;  %v33_v3 = vsel %vm29_vm0, %v545_v1, 0.0  ;;  %v75_v14 = vld [vmem:[%s648_s3] sm:$0xff]  ;;  %v76_v15 = vld [vmem:[%s648_s3 + $0x8] sm:$0xff] }
   0x3   :  { %31 = vadd.xlane.f32.xlu0 %v30_v2  ;;  %v77_v16 = vld [vmem:[%s648_s3 + $0x10] sm:$0xff]  ;;  %v415_v17 = vpack.c.bf16 %v76_v15, %v75_v14  ;;  %v78_v18 = vld [vmem:[%s648_s3 + $0x18] sm:$0xff]  ;;  %v339_v27 = vld [vmem:[%s646_s1] ss:$0 sm:$0xff]  ;;  %s494_s20 = smov [#allocation2]  }
   0x4   :  { %v419_v19 = vpack.c.bf16 %v78_v18, %v77_v16  ;;  %v340_v29 = vld [vmem:[%s647_s2] ss:$0 sm:$0xff]  ;;  %v222_v37 = vld [vmem:[%s650_s5 + $0x8] sm:$0xff]  ;;  %v223_v38 = vld [vmem:[%s650_s5 + $0x10] sm:$0xff]  ;;  %s328_s21 = sshll.u32 %s494_s20, 4  ;;  %s329_s21 = int_to_ptr.vmem [resolvable:$true] %s328_s21 }
   0x5   :  { %416 = vmatprep.subr.bf16.mxu0 %v415_v17  ;;  %v221_v36 = vld [vmem:[%s650_s5] sm:$0xff]  ;;  %v224_v40 = vld [vmem:[%s650_s5 + $0x18] sm:$0xff]  ;;  %v226_v43 = vld [vmem:[%s650_s5 + $0x28] sm:$0xff]  ;;  %s470_s22 = scalar_lea.vmem %s329_s21, 256  ;;  %p475_p1 = scmp.lt.s32.totalorder %s329_s21, %s329_s21 }
   0x6   :  { %418 = vmatpush3.bf16.msra.mxu0 %v415_v17  ;;  %v423_v39 = vpack.c.bf16 %v222_v37, %v221_v36  ;;  %v427_v41 = vpack.c.bf16 %v224_v40, %v223_v38  ;;  %v225_v42 = vld [vmem:[%s650_s5 + $0x20] sm:$0xff]  ;;  %v227_v45 = vld [vmem:[%s650_s5 + $0x30] sm:$0xff]  ;;  %v228_v46 = vld [vmem:[%s650_s5 + $0x38] sm:$0xff]  ;;  %p471_p0 = scmp.ne.s32.totalorder %s329_s21, %s470_s22  ;;  %p476_p2 = scmp.lt.s32.totalorder %s470_s22, %s470_s22 }
   0x7   :  { %34 = vadd.xlane.f32.xlu0 %v33_v3  ;;  %420 = vmatprep.subr.bf16.mxu0 %v419_v19  ;;  %v431_v44 = vpack.c.bf16 %v226_v43, %v225_v42  ;;  %v435_v47 = vpack.c.bf16 %v228_v46, %v227_v45  ;;  %v229_v48 = vld [vmem:[%s650_s5 + $0x40] sm:$0xff]  ;;  %v230_v49 = vld [vmem:[%s650_s5 + $0x48] sm:$0xff]  ;;  %v231_v51 = vld [vmem:[%s650_s5 + $0x50] sm:$0xff] }
   0x8   :  { %424 = vmatprep.subr.bf16.mxu1 %v423_v39  ;;  %v439_v50 = vpack.c.bf16 %v230_v49, %v229_v48  ;;  %v232_v52 = vld [vmem:[%s650_s5 + $0x58] sm:$0xff]  ;;  %v233_v54 = vld [vmem:[%s650_s5 + $0x60] sm:$0xff]  ;;  %v234_v55 = vld [vmem:[%s650_s5 + $0x68] sm:$0xff]  ;;  %p477_p3 = por %p476_p2, %p475_p1 }
   0x9   :  { %426 = vmatpush3.bf16.msra.mxu1 %v423_v39  ;;  %v443_v53 = vpack.c.bf16 %v232_v52, %v231_v51  ;;  %v447_v56 = vpack.c.bf16 %v234_v55, %v233_v54  ;;  %v235_v57 = vld [vmem:[%s650_s5 + $0x70] sm:$0xff]  ;;  %v236_v58 = vld [vmem:[%s650_s5 + $0x78] sm:$0xff]  ;;  %v341_v60 = vld [vmem:[%s649_s4] ss:$0 sm:$0xff] }
   0xa   :  { %422 = vmatpush3.bf16.msra.mxu0 %v419_v19  ;;  %428 = vmatprep.subr.bf16.mxu1 %v427_v41  ;;  %v451_v59 = vpack.c.bf16 %v236_v58, %v235_v57  ;;  %p478_p4 = pnand %p477_p3, %p471_p0 }
   0xd   :  { %430 = vmatpush3.bf16.msra.mxu1 %v427_v41 }
   0xe   :  { %432 = vmatprep.subr.bf16.mxu1 %v431_v44 }
  0x11   :  { %434 = vmatpush3.bf16.msra.mxu1 %v431_v44 }
  0x12   :  { %436 = vmatprep.subr.bf16.mxu1 %v435_v47 }
  0x15   :  { %438 = vmatpush3.bf16.msra.mxu1 %v435_v47 }
  0x16   :  { %440 = vmatprep.subr.bf16.mxu1 %v439_v50 }
  0x19   :  { %442 = vmatpush3.bf16.msra.mxu1 %v439_v50 }
  0x1a   :  { %444 = vmatprep.subr.bf16.mxu1 %v443_v53 }
  0x1d   :  { %446 = vmatpush3.bf16.msra.mxu1 %v443_v53  ;;  %v344_v53 = vld [vmem:[%s651_s6] ss:$0 sm:$0xff] }
  0x1e   :  { %448 = vmatprep.subr.bf16.mxu1 %v447_v56 }
  0x21   :  { %450 = vmatpush3.bf16.msra.mxu1 %v447_v56 }
  0x22   :  { %452 = vmatprep.subr.bf16.mxu1 %v451_v59 }
  0x25   :  { %454 = vmatpush3.bf16.msra.mxu1 %v451_v59 }
  0x90   :  { %v32_v4 = vpop.xlane.xlu0 %31 }
  0x91   :  { %v37_v5 = vmul.f32 0.03125, %v32_v4 }
  0x93   :  { %v39_v6 = vsub.f32 %v540_v0, %v37_v5 }
  0x94   :  { %v35_v7 = vpop.xlane.xlu0 %34 }
  0x95   :  { %v38_v8 = vmul.f32 0.03125, %v35_v7  ;;  %v41_v9 = vmul.f32 %v39_v6, %v39_v6 }
  0x97   :  { %v40_v10 = vsub.f32 %v545_v1, %v38_v8  ;;  %v43_v11 = vsel %vm29_vm0, %v41_v9, 0.0 }
  0x98   :  { %44 = vadd.xlane.f32.xlu1 %v43_v11 }
  0x99   :  { %v42_v12 = vmul.f32 %v40_v10, %v40_v10 }
  0x9b   :  { %v46_v13 = vsel %vm29_vm0, %v42_v12, 0.0 }
  0x9c   :  { %47 = vadd.xlane.f32.xlu1 %v46_v13 }
 0x125   :  { %v45_v20 = vpop.xlane.xlu1 %44 }
 0x126   :  { %v49_v21 = vmul.f32 0.03125, %v45_v20 }
 0x128   :  { %v51_v22 = vadd.f32 1e-05, %v49_v21 }
 0x129   :  { %v48_v23 = vpop.xlane.xlu1 %47 }
 0x12a   :  { %458 = vrsqrt.f32 %v51_v22  ;;  %v50_v24 = vmul.f32 0.03125, %v48_v23 }
 0x12c   :  { %v52_v25 = vadd.f32 1e-05, %v50_v24 }
 0x12e   :  { %460 = vrsqrt.f32 %v52_v25 }
 0x134   :  { %v459_v26 = vpop.eup %458 }
 0x135   :  { %v55_v28 = vmul.f32 %v459_v26, %v39_v6 }
 0x137   :  { %v64_v30 = vmul.f32 %v339_v27, %v55_v28 }
 0x138   :  { %v461_v31 = vpop.eup %460 }
 0x139   :  { %v56_v32 = vmul.f32 %v461_v31, %v40_v10  ;;  %v73_v33 = vadd.f32 %v340_v29, %v64_v30 }
 0x13b   :  { %v65_v34 = vmul.f32 %v339_v27, %v56_v32  ;;  %377 = vmatprep.mubr.msk.f32.mxu0 %vm29_vm0, %v73_v33 }
 0x13d   :  { %v74_v35 = vadd.f32 %v340_v29, %v65_v34 }
 0x13f   :  { %378 = vmatmul.mubr.msk.f32.vlgmr.msra.gmra.mrb[0].mxu0 %vm29_vm0, %v74_v35 }
 0x212   :  { %v379_v61 = vpop.f32.mrb[0].mxu0 }
 0x213   :  { %v164_v62 = vadd.f32 %v379_v61, %v341_v60  ;;  %v158_v63 = vpop.f32.mrb[1].mxu0 }
 0x214   :  { %v159_v2 = vadd.f32 %v341_v60, %v158_v63 }
 0x215   :  { %v170_v3 = vmul.f32 0.70710677, %v164_v62  ;;  %v168_v50 = vmul.f32 0.5, %v164_v62 }
 0x216   :  { %v169_v4 = vmul.f32 0.70710677, %v159_v2  ;;  %v167_v48 = vmul.f32 0.5, %v159_v2 }
 0x217   :  { %v172_v5 = vand.u32 2147483647, %v170_v3  ;;  %vm212_vm1 = vcmp.lt.f32.partialorder %v170_v3, 0.0 }
 0x218   :  { %v171_v6 = vand.u32 2147483647, %v169_v4  ;;  %vm211_vm2 = vcmp.lt.f32.partialorder %v169_v4, 0.0 }
 0x219   :  { %v174_v7 = vmul.f32 0.3275911, %v172_v5  ;;  %v200_v11 = vsub.f32 0.0, %v172_v5 }
 0x21a   :  { %v173_v8 = vmul.f32 0.3275911, %v171_v6  ;;  %v199_v12 = vsub.f32 0.0, %v171_v6 }
 0x21b   :  { %v176_v9 = vadd.f32 1.0, %v174_v7  ;;  %v202_v14 = vmul.f32 %v200_v11, %v172_v5 }
 0x21c   :  { %v175_v10 = vadd.f32 1.0, %v173_v8  ;;  %v201_v16 = vmul.f32 %v199_v12, %v171_v6 }
 0x21d   :  { %462 = vrcp.f32 %v176_v9  ;;  %v205_v20 = vmul.f32 1.442695, %v202_v14 }
 0x21e   :  { %464 = vrcp.f32 %v175_v10  ;;  %v203_v22 = vmul.f32 1.442695, %v201_v16 }
 0x21f   :  { %466 = vpow2.f32 %v205_v20 }
 0x220   :  { %468 = vpow2.f32 %v203_v22 }
 0x227   :  { %v463_v13 = vpop.eup %462 }
 0x228   :  { %v465_v15 = vpop.eup %464  ;;  %v182_v17 = vmul.f32 1.0614054, %v463_v13 }
 0x229   :  { %v181_v18 = vmul.f32 1.0614054, %v465_v15  ;;  %v467_v36 = vpop.eup %466 }
 0x22a   :  { %v184_v19 = vadd.f32 -1.4531521, %v182_v17  ;;  %v469_v38 = vpop.eup %468 }
 0x22b   :  { %v183_v21 = vadd.f32 -1.4531521, %v181_v18 }
 0x22c   :  { %v186_v23 = vmul.f32 %v463_v13, %v184_v19 }
 0x22d   :  { %v185_v24 = vmul.f32 %v465_v15, %v183_v21 }
 0x22e   :  { %v188_v25 = vadd.f32 1.4214138, %v186_v23 }
 0x22f   :  { %v187_v26 = vadd.f32 1.4214138, %v185_v24 }
 0x230   :  { %v190_v27 = vmul.f32 %v463_v13, %v188_v25 }
 0x231   :  { %v189_v28 = vmul.f32 %v465_v15, %v187_v26 }
 0x232   :  { %v192_v29 = vadd.f32 -0.28449672, %v190_v27 }
 0x233   :  { %v191_v30 = vadd.f32 -0.28449672, %v189_v28 }
 0x234   :  { %v194_v31 = vmul.f32 %v463_v13, %v192_v29 }
 0x235   :  { %v193_v32 = vmul.f32 %v465_v15, %v191_v30 }
 0x236   :  { %v196_v33 = vadd.f32 0.2548296, %v194_v31 }
 0x237   :  { %v195_v34 = vadd.f32 0.2548296, %v193_v32 }
 0x238   :  { %v198_v35 = vmul.f32 %v463_v13, %v196_v33 }
 0x239   :  { %v197_v37 = vmul.f32 %v465_v15, %v195_v34 }
 0x23a   :  { %v208_v39 = vmul.f32 %v467_v36, %v198_v35 }
 0x23b   :  { %v207_v40 = vmul.f32 %v469_v38, %v197_v37 }
 0x23c   :  { %v210_v41 = vsub.f32 1.0, %v208_v39 }
 0x23d   :  { %v209_v42 = vsub.f32 1.0, %v207_v40 }
 0x23e   :  { %v214_v43 = vsub.f32 0.0, %v210_v41 }
 0x23f   :  { %v213_v44 = vsub.f32 0.0, %v209_v42 }
 0x240   :  { %v216_v45 = vsel %vm212_vm1, %v214_v43, %v210_v41 }
 0x241   :  { %v215_v46 = vsel %vm211_vm2, %v213_v44, %v209_v42  ;;  %v218_v47 = vadd.f32 1.0, %v216_v45 }
 0x242   :  { %v217_v49 = vadd.f32 1.0, %v215_v46 }
 0x243   :  { %v220_v52 = vmul.f32 %v218_v47, %v168_v50 }
 0x244   :  { %v219_v51 = vmul.f32 %v217_v49, %v167_v48 }
 0x246   :  { %412 = vmatprep.mubr.f32.mxu1 %v219_v51 }
 0x247   :  { %413 = vmatmul.mubr.f32.vlgmr.msra.gmra.mrb[0].mxu1 %v220_v52 }
 0x31a   :  { %v414_v54 = vpop.f32.mrb[0].mxu1 }
 0x31b   :  { %v316_v55 = vadd.f32 %v414_v54, %v344_v53  ;;  %v310_v56 = vpop.f32.mrb[1].mxu1 }
 0x31c   :  { %v311_v57 = vadd.f32 %v344_v53, %v310_v56 }
 0x31d   :  { %v320_v58 = vadd.f32 %v316_v55, %v545_v1 }
 0x31e   :  { %v319_v59 = vadd.f32 %v311_v57, %v540_v0 }
 0x31f   :  { %322 = vst.msk [vmem:[#allocation2 + $0x8] sm:$0xff] %vm29_vm0, %v320_v58 }
 0x320   :  { %321 = vst.msk [vmem:[#allocation2] sm:$0xff] %vm29_vm0, %v319_v59 }
 0x321   :  { %481 = shalt.err (!%p478_p4)
}
 0x322   :  { %s482_s24 = scalar_lea.hbm %s652_s7, 256 }
 0x323   :  { %p483_p5 = scmp.ne.s32.totalorder %s652_s7, %s482_s24  ;;  %p486_p6 = scmp.lt.u32.totalorder %s482_s24, %s652_s7 }
 0x325   :  { %p488_p7 = pnand %p486_p6, %p483_p5 }
 0x327   :  { %491 = shalt.err (!%p488_p7)
}
 0x328   :  { %s495_s28 = smov 128   ;;  %s496_s29 = smov 8  }
 0x329   :  { %334 = dma.vmem_to_hbm [thread:$0]  %s329_s21, 256, %s652_s7, [#allocation3], %s495_s28, %s495_s28, %s496_s29  }
 0x32a   :  { %492 = dma.done.wait [#allocation3], 256  }
 0x32b   :  { %493 = vsyncadd [#allocation3], 4294967040 }
 0x32c   :  { %338 = vsyncpa [#allocation3], 1 }

// kernel: block_forward.5
= control target key start
LH: loop header
LB: loop body
LE: loop exit
PB: predicated region body
PF: predicated region fallthrough
CT: control target
= control target key end

     0   :  { %vm38_vm0 = vcmask 64512   ;;  %v1522_v0 = vmov 0.0   ;;  %vm1523_vm1 = vmmov 0   ;;  %v655_v17 = vlaneseq  ;;  %s1756_s1 = inlined_call_operand.vmem [shape: f32[8,8,8], index: 1, kind: input, shape index: {}]   ;;  %s1757_s0 = inlined_call_operand.vmem [shape: f32[8,8,8], index: 0, kind: input, shape index: {}]   ;;  %s1758_s2 = inlined_call_operand.vmem [shape: f32[8,8,8], index: 2, kind: input, shape index: {}]   ;;  %s1759_s3 = inlined_call_operand.vmem [shape: f32[8,8,8], index: 3, kind: output, shape index: {}]  }
   0x1   :  { %1408 = vmatprep.subr.mxu0 %v1522_v0  ;;  %v22_v1 = vld [vmem:[%s1756_s1] sm:$0xff]  ;;  %1410 = vmatprep.mubr.msk.f32.mxu0 %vm1523_vm1, %v1522_v0  ;;  %v23_v2 = vld [vmem:[%s1756_s1 + $0x8] sm:$0xff]  ;;  %v24_v4 = vld [vmem:[%s1756_s1 + $0x10] sm:$0xff] }
   0x2   :  { %1409 = vmatpush3.xpose.msk.msra.mxu0 %vm38_vm0, %v22_v1  ;;  %v14_v3 = vld [vmem:[%s1757_s0] sm:$0xff]  ;;  %1413 = vmatprep.subr.mxu1 %v1522_v0  ;;  %v15_v5 = vld [vmem:[%s1757_s0 + $0x8] sm:$0xff]  ;;  %v25_v6 = vld [vmem:[%s1756_s1 + $0x18] sm:$0xff]  ;;  %v656_v18 = vshrl.u32 %v655_v17, 7  ;;  %v658_v19 = vand.u32 127, %v655_v17 }
   0x3   :  { %1418 = vmatprep.subr.mxu0 %v1522_v0  ;;  %1414 = vmatpush3.xpose.msk.msra.mxu1 %vm38_vm0, %v23_v2  ;;  %v16_v7 = vld [vmem:[%s1757_s0 + $0x10] sm:$0xff]  ;;  %v26_v8 = vld [vmem:[%s1756_s1 + $0x20] sm:$0xff]  ;;  %v17_v9 = vld [vmem:[%s1757_s0 + $0x18] sm:$0xff] }
   0x4   :  { %1415 = vmatprep.mubr.msk.f32.mxu1 %vm1523_vm1, %v1522_v0  ;;  %1423 = vmatprep.subr.mxu1 %v1522_v0  ;;  %v27_v10 = vld [vmem:[%s1756_s1 + $0x28] sm:$0xff]  ;;  %v18_v11 = vld [vmem:[%s1757_s0 + $0x20] sm:$0xff]  ;;  %v28_v12 = vld [vmem:[%s1756_s1 + $0x30] sm:$0xff]  ;;  %vm1638_vm2 = vcmp.le.s32.totalorder %v658_v19, %v656_v18 }
   0x5   :  { %1411 = vmatmul.mubr.msk.f32.vlgmr.msra.gmra.mrb[0].mxu0 %vm38_vm0, %v14_v3  ;;  %v19_v13 = vld [vmem:[%s1757_s0 + $0x28] sm:$0xff]  ;;  %v29_v14 = vld [vmem:[%s1756_s1 + $0x38] sm:$0xff]  ;;  %v20_v15 = vld [vmem:[%s1757_s0 + $0x30] sm:$0xff] }
   0x6   :  { %1419 = vmatpush3.xpose.msk.msra.mxu0 %vm38_vm0, %v24_v4  ;;  %1420 = vmatprep.mubr.msk.f32.mxu0 %vm1523_vm1, %v1522_v0  ;;  %v21_v16 = vld [vmem:[%s1757_s0 + $0x38] sm:$0xff]  ;;  %v30_v61 = vld [vmem:[%s1758_s2] sm:$0xff]  ;;  %v31_v62 = vld [vmem:[%s1758_s2 + $0x8] sm:$0xff] }
   0x7   :  { %1416 = vmatmul.mubr.msk.f32.vlgmr.msra.gmra.mrb[0].mxu1 %vm38_vm0, %v15_v5  ;;  %1428 = vmatprep.subr.mxu0 %v1522_v0  ;;  %v32_v19 = vld [vmem:[%s1758_s2 + $0x10] sm:$0xff] }
   0x8   :  { %1424 = vmatpush3.xpose.msk.msra.mxu1 %vm38_vm0, %v25_v6  ;;  %1425 = vmatprep.mubr.msk.f32.mxu1 %vm1523_vm1, %v1522_v0 }
   0x9   :  { %1421 = vmatmul.mubr.msk.f32.vlgmr.msra.gmra.mrb[2].mxu0 %vm38_vm0, %v16_v7  ;;  %1433 = vmatprep.subr.mxu1 %v1522_v0 }
   0xa   :  { %1429 = vmatpush3.xpose.msk.msra.mxu0 %vm38_vm0, %v26_v8  ;;  %1430 = vmatprep.mubr.msk.f32.mxu0 %vm1523_vm1, %v1522_v0 }
   0xb   :  { %1426 = vmatmul.mubr.msk.f32.vlgmr.msra.gmra.mrb[2].mxu1 %vm38_vm0, %v17_v9  ;;  %1438 = vmatprep.subr.mxu0 %v1522_v0 }
   0xc   :  { %1434 = vmatpush3.xpose.msk.msra.mxu1 %vm38_vm0, %v27_v10  ;;  %1435 = vmatprep.mubr.msk.f32.mxu1 %vm1523_vm1, %v1522_v0 }
   0xd   :  { %1431 = vmatmul.mubr.msk.f32.vlgmr.msra.gmra.mrb[4].mxu0 %vm38_vm0, %v18_v11  ;;  %1443 = vmatprep.subr.mxu1 %v1522_v0 }
   0xe   :  { %1439 = vmatpush3.xpose.msk.msra.mxu0 %vm38_vm0, %v28_v12  ;;  %1440 = vmatprep.mubr.msk.f32.mxu0 %vm1523_vm1, %v1522_v0 }
   0xf   :  { %1436 = vmatmul.mubr.msk.f32.vlgmr.msra.gmra.mrb[4].mxu1 %vm38_vm0, %v19_v13  ;;  %1448 = vmatprep.subr.mxu0 %v1522_v0 }
  0x10   :  { %1444 = vmatpush3.xpose.msk.msra.mxu1 %vm38_vm0, %v29_v14  ;;  %1445 = vmatprep.mubr.msk.f32.mxu1 %vm1523_vm1, %v1522_v0 }
  0x11   :  { %1441 = vmatmul.mubr.msk.f32.vlgmr.msra.gmra.mrb[6].mxu0 %vm38_vm0, %v20_v15  ;;  %1453 = vmatprep.subr.mxu1 %v1522_v0 }
  0x12   :  { %1450 = vmatprep.mubr.msk.f32.mxu0 %vm1523_vm1, %v1522_v0  ;;  %1449 = vmatpush3.msra.mxu0 %v30_v61 }
  0x13   :  { %1446 = vmatmul.mubr.msk.f32.vlgmr.msra.gmra.mrb[6].mxu1 %vm38_vm0, %v21_v16  ;;  %1458 = vmatprep.subr.mxu0 %v1522_v0 }
  0x14   :  { %1455 = vmatprep.mubr.msk.f32.mxu1 %vm1523_vm1, %v1522_v0  ;;  %1454 = vmatpush3.msra.mxu1 %v31_v62 }
  0x15   :  { %1463 = vmatprep.subr.mxu1 %v1522_v0 }
  0xd8   :  { %v111_v20 = vpop.f32.mrb[0].mxu0 }
  0xd9   :  { %v647_v22 = vmul.f32 0.35355338, %v111_v20  ;;  %v1412_v23 = vpop.f32.mrb[1].mxu0 }
  0xda   :  { %v187_v24 = vpop.f32.mrb[0].mxu1 }
  0xdb   :  { %v648_v25 = vmul.f32 0.35355338, %v187_v24  ;;  %v1417_v26 = vpop.f32.mrb[1].mxu1  ;;  %v660_v27 = vsel %vm1638_vm2, %v647_v22, -inf }
  0xdc   :  { %v263_v28 = vpop.f32.mrb[2].mxu0  ;;  %v668_v29 = vsel %vm38_vm0, %v660_v27, -inf  ;;  %v33_v26 = vld [vmem:[%s1758_s2 + $0x18] sm:$0xff] }
  0xdd   :  { %v649_v30 = vmul.f32 0.35355338, %v263_v28  ;;  %669 = vmax.xlane.f32.xlu0 %v668_v29  ;;  %v1422_v31 = vpop.f32.mrb[3].mxu0  ;;  %v661_v32 = vsel %vm1638_vm2, %v648_v25, -inf }
  0xde   :  { %v339_v33 = vpop.f32.mrb[2].mxu1  ;;  %v671_v34 = vsel %vm38_vm0, %v661_v32, -inf  ;;  %v34_v31 = vld [vmem:[%s1758_s2 + $0x20] sm:$0xff] }
  0xdf   :  { %v650_v35 = vmul.f32 0.35355338, %v339_v33  ;;  %v1427_v36 = vpop.f32.mrb[3].mxu1  ;;  %v662_v37 = vsel %vm1638_vm2, %v649_v30, -inf }
  0xe0   :  { %v415_v38 = vpop.f32.mrb[4].mxu0  ;;  %v674_v39 = vsel %vm38_vm0, %v662_v37, -inf }
  0xe1   :  { %v651_v40 = vmul.f32 0.35355338, %v415_v38  ;;  %672 = vmax.xlane.f32.xlu0 %v671_v34  ;;  %675 = vmax.xlane.f32.xlu1 %v674_v39  ;;  %v1432_v41 = vpop.f32.mrb[5].mxu0  ;;  %v663_v42 = vsel %vm1638_vm2, %v650_v35, -inf  ;;  %v35_v34 = vld [vmem:[%s1758_s2 + $0x28] sm:$0xff]  ;;  %v36_v38 = vld [vmem:[%s1758_s2 + $0x30] sm:$0xff] }
  0xe2   :  { %v491_v43 = vpop.f32.mrb[4].mxu1  ;;  %v677_v44 = vsel %vm38_vm0, %v663_v42, -inf  ;;  %v37_v41 = vld [vmem:[%s1758_s2 + $0x38] sm:$0xff] }
  0xe3   :  { %v652_v45 = vmul.f32 0.35355338, %v491_v43  ;;  %v1437_v46 = vpop.f32.mrb[5].mxu1  ;;  %v664_v47 = vsel %vm1638_vm2, %v651_v40, -inf }
  0xe4   :  { %v567_v48 = vpop.f32.mrb[6].mxu0  ;;  %v680_v49 = vsel %vm38_vm0, %v664_v47, -inf }
  0xe5   :  { %v653_v50 = vmul.f32 0.35355338, %v567_v48  ;;  %678 = vmax.xlane.f32.xlu1 %v677_v44  ;;  %681 = vmax.xlane.f32.xlu0 %v680_v49  ;;  %v665_v51 = vsel %vm1638_vm2, %v652_v45, -inf  ;;  %v1442_v52 = vpop.f32.mrb[7].mxu0 }
  0xe6   :  { %v643_v53 = vpop.f32.mrb[6].mxu1  ;;  %v683_v54 = vsel %vm38_vm0, %v665_v51, -inf }
  0xe7   :  { %v654_v55 = vmul.f32 0.35355338, %v643_v53  ;;  %v1447_v56 = vpop.f32.mrb[7].mxu1  ;;  %v666_v57 = vsel %vm1638_vm2, %v653_v50, -inf }
  0xe8   :  { %v686_v58 = vsel %vm38_vm0, %v666_v57, -inf }
  0xe9   :  { %684 = vmax.xlane.f32.xlu1 %v683_v54  ;;  %687 = vmax.xlane.f32.xlu0 %v686_v58  ;;  %v667_v59 = vsel %vm1638_vm2, %v654_v55, -inf }
  0xea   :  { %v689_v60 = vsel %vm38_vm0, %v667_v59, -inf }
  0xed   :  { %690 = vmax.xlane.f32.xlu1 %v689_v60 }
 0x16a   :  { %v670_v63 = vpop.xlane.xlu0 %669 }
 0x16b   :  { %v692_v1 = vsub.f32 %v660_v27, %v670_v63 }
 0x16d   :  { %v700_v2 = vmul.f32 1.442695, %v692_v1 }
 0x16e   :  { %v673_v3 = vpop.xlane.xlu0 %672  ;;  %v676_v4 = vpop.xlane.xlu1 %675 }
 0x16f   :  { %1490 = vpow2.f32 %v700_v2  ;;  %v693_v5 = vsub.f32 %v661_v32, %v673_v3  ;;  %v694_v6 = vsub.f32 %v662_v37, %v676_v4 }
 0x171   :  { %v702_v7 = vmul.f32 1.442695, %v693_v5  ;;  %v704_v8 = vmul.f32 1.442695, %v694_v6 }
 0x172   :  { %v679_v9 = vpop.xlane.xlu1 %678  ;;  %v682_v10 = vpop.xlane.xlu0 %681 }
 0x173   :  { %1492 = vpow2.f32 %v702_v7  ;;  %v695_v11 = vsub.f32 %v663_v42, %v679_v9  ;;  %v696_v12 = vsub.f32 %v664_v47, %v682_v10 }
 0x174   :  { %1494 = vpow2.f32 %v704_v8 }
 0x175   :  { %v706_v13 = vmul.f32 1.442695, %v695_v11  ;;  %v708_v14 = vmul.f32 1.442695, %v696_v12 }
 0x176   :  { %v685_v15 = vpop.xlane.xlu1 %684  ;;  %v688_v16 = vpop.xlane.xlu0 %687 }
 0x177   :  { %1496 = vpow2.f32 %v706_v13  ;;  %v697_v17 = vsub.f32 %v665_v51, %v685_v15  ;;  %v698_v18 = vsub.f32 %v666_v57, %v688_v16 }
 0x178   :  { %1498 = vpow2.f32 %v708_v14 }
 0x179   :  { %v1491_v20 = vpop.eup %1490  ;;  %v710_v21 = vmul.f32 1.442695, %v697_v17  ;;  %v712_v22 = vmul.f32 1.442695, %v698_v18 }
 0x17a   :  { %1451 = vmatmul.mubr.msk.f32.vlgmr.msra.gmra.mrb[8].mxu0 %vm38_vm0, %v1491_v20  ;;  %v691_v23 = vpop.xlane.xlu1 %690  ;;  %v716_v24 = vsel %vm38_vm0, %v1491_v20, 0.0 }
 0x17b   :  { %1500 = vpow2.f32 %v710_v21  ;;  %v699_v25 = vsub.f32 %v667_v59, %v691_v23  ;;  %717 = vadd.xlane.f32.xlu0 %v716_v24  ;;  %1459 = vmatpush3.msra.mxu0 %v32_v19 }
 0x17c   :  { %1502 = vpow2.f32 %v712_v22  ;;  %1460 = vmatprep.mubr.msk.f32.mxu0 %vm1523_vm1, %v1522_v0  ;;  %1468 = vmatprep.subr.mxu0 %v1522_v0 }
 0x17d   :  { %v1493_v27 = vpop.eup %1492  ;;  %v714_v28 = vmul.f32 1.442695, %v699_v25 }
 0x17e   :  { %v1495_v29 = vpop.eup %1494  ;;  %1456 = vmatmul.mubr.msk.f32.vlgmr.msra.gmra.mrb[8].mxu1 %vm38_vm0, %v1493_v27  ;;  %v719_v30 = vsel %vm38_vm0, %v1493_v27, 0.0 }
 0x17f   :  { %1504 = vpow2.f32 %v714_v28  ;;  %1461 = vmatmul.mubr.msk.f32.vlgmr.msra.gmra.mrb[10].mxu0 %vm38_vm0, %v1495_v29  ;;  %1464 = vmatpush3.msra.mxu1 %v33_v26  ;;  %v722_v32 = vsel %vm38_vm0, %v1495_v29, 0.0 }
 0x180   :  { %720 = vadd.xlane.f32.xlu1 %v719_v30  ;;  %723 = vadd.xlane.f32.xlu0 %v722_v32 }
 0x181   :  { %v1497_v33 = vpop.eup %1496  ;;  %1465 = vmatprep.mubr.msk.f32.mxu1 %vm1523_vm1, %v1522_v0  ;;  %1469 = vmatpush3.msra.mxu0 %v34_v31 }
 0x182   :  { %v1499_v35 = vpop.eup %1498  ;;  %1470 = vmatprep.mubr.msk.f32.mxu0 %vm1523_vm1, %v1522_v0  ;;  %1466 = vmatmul.mubr.msk.f32.vlgmr.msra.gmra.mrb[10].mxu1 %vm38_vm0, %v1497_v33  ;;  %v725_v36 = vsel %vm38_vm0, %v1497_v33, 0.0 }
 0x183   :  { %1471 = vmatmul.mubr.msk.f32.vlgmr.msra.gmra.mrb[12].mxu0 %vm38_vm0, %v1499_v35  ;;  %1473 = vmatprep.subr.mxu1 %v1522_v0  ;;  %v728_v37 = vsel %vm38_vm0, %v1499_v35, 0.0 }
 0x184   :  { %1474 = vmatpush3.msra.mxu1 %v35_v34  ;;  %726 = vadd.xlane.f32.xlu1 %v725_v36 }
 0x185   :  { %v1501_v39 = vpop.eup %1500  ;;  %729 = vadd.xlane.f32.xlu0 %v728_v37  ;;  %1478 = vmatprep.subr.mxu0 %v1522_v0 }
 0x186   :  { %v1503_v40 = vpop.eup %1502  ;;  %1475 = vmatprep.mubr.msk.f32.mxu1 %vm1523_vm1, %v1522_v0  ;;  %1479 = vmatpush3.msra.mxu0 %v36_v38  ;;  %v731_v42 = vsel %vm38_vm0, %v1501_v39, 0.0 }
 0x187   :  { %1480 = vmatprep.mubr.msk.f32.mxu0 %vm1523_vm1, %v1522_v0  ;;  %1476 = vmatmul.mubr.msk.f32.vlgmr.msra.gmra.mrb[12].mxu1 %vm38_vm0, %v1501_v39  ;;  %v734_v43 = vsel %vm38_vm0, %v1503_v40, 0.0 }
 0x188   :  { %1481 = vmatmul.mubr.msk.f32.vlgmr.msra.gmra.mrb[14].mxu0 %vm38_vm0, %v1503_v40  ;;  %1483 = vmatprep.subr.mxu1 %v1522_v0 }
 0x189   :  { %v1505_v44 = vpop.eup %1504  ;;  %1484 = vmatpush3.msra.mxu1 %v37_v41  ;;  %732 = vadd.xlane.f32.xlu1 %v731_v42 }
 0x18a   :  { %735 = vadd.xlane.f32.xlu0 %v734_v43  ;;  %1485 = vmatprep.mubr.msk.f32.mxu1 %vm1523_vm1, %v1522_v0  ;;  %v737_v45 = vsel %vm38_vm0, %v1505_v44, 0.0 }
 0x18b   :  { %1486 = vmatmul.mubr.msk.f32.vlgmr.msra.gmra.mrb[14].mxu1 %vm38_vm0, %v1505_v44 }
 0x18d   :  { %738 = vadd.xlane.f32.xlu1 %v737_v45 }
 0x208   :  { %v718_v46 = vpop.xlane.xlu0 %717 }
 0x209   :  { %1506 = vrcp.f32 %v718_v46 }
 0x20d   :  { %v721_v47 = vpop.xlane.xlu1 %720  ;;  %v724_v48 = vpop.xlane.xlu0 %723 }
 0x20e   :  { %1508 = vrcp.f32 %v721_v47 }
 0x20f   :  { %1510 = vrcp.f32 %v724_v48 }
 0x211   :  { %v727_v49 = vpop.xlane.xlu1 %726 }
 0x212   :  { %v730_v50 = vpop.xlane.xlu0 %729  ;;  %1512 = vrcp.f32 %v727_v49 }
 0x213   :  { %1514 = vrcp.f32 %v730_v50  ;;  %v1507_v52 = vpop.eup %1506 }
 0x216   :  { %v733_v51 = vpop.xlane.xlu1 %732 }
 0x217   :  { %v736_v54 = vpop.xlane.xlu0 %735  ;;  %1516 = vrcp.f32 %v733_v51 }
 0x218   :  { %v1509_v56 = vpop.eup %1508  ;;  %1518 = vrcp.f32 %v736_v54 }
 0x219   :  { %v1511_v59 = vpop.eup %1510 }
 0x21a   :  { %v739_v57 = vpop.xlane.xlu1 %738 }
 0x21b   :  { %1520 = vrcp.f32 %v739_v57 }
 0x21c   :  { %v1513_v2 = vpop.eup %1512 }
 0x21d   :  { %v1515_v4 = vpop.eup %1514 }
 0x221   :  { %v1517_v10 = vpop.eup %1516 }
 0x222   :  { %v1519_v12 = vpop.eup %1518 }
 0x225   :  { %v1521_v18 = vpop.eup %1520 }
 0x24d   :  { %v809_v53 = vpop.f32.mrb[8].mxu0 }
 0x24e   :  { %v1325_v0 = vmul.f32 %v1507_v52, %v809_v53  ;;  %v1452_v55 = vpop.f32.mrb[9].mxu0 }
 0x250   :  { %1340 = vst.msk [vmem:[%s1759_s3] sm:$0xff] %vm38_vm0, %v1325_v0 }
 0x251   :  { %v882_v58 = vpop.f32.mrb[8].mxu1 }
 0x252   :  { %v1327_v60 = vmul.f32 %v1509_v56, %v882_v58  ;;  %v955_v61 = vpop.f32.mrb[10].mxu0  ;;  %v1457_v62 = vpop.f32.mrb[9].mxu1 }
 0x253   :  { %v1329_v63 = vmul.f32 %v1511_v59, %v955_v61  ;;  %v1462_v1 = vpop.f32.mrb[11].mxu0 }
 0x254   :  { %1341 = vst.msk [vmem:[%s1759_s3 + $0x8] sm:$0xff] %vm38_vm0, %v1327_v60 }
 0x255   :  { %1342 = vst.msk [vmem:[%s1759_s3 + $0x10] sm:$0xff] %vm38_vm0, %v1329_v63  ;;  %v1028_v3 = vpop.f32.mrb[10].mxu1 }
 0x256   :  { %v1331_v5 = vmul.f32 %v1513_v2, %v1028_v3  ;;  %v1101_v6 = vpop.f32.mrb[12].mxu0  ;;  %v1467_v7 = vpop.f32.mrb[11].mxu1 }
 0x257   :  { %v1333_v8 = vmul.f32 %v1515_v4, %v1101_v6  ;;  %v1472_v9 = vpop.f32.mrb[13].mxu0 }
 0x258   :  { %1343 = vst.msk [vmem:[%s1759_s3 + $0x18] sm:$0xff] %vm38_vm0, %v1331_v5 }
 0x259   :  { %1344 = vst.msk [vmem:[%s1759_s3 + $0x20] sm:$0xff] %vm38_vm0, %v1333_v8 }
 0x25a   :  { %v1174_v11 = vpop.f32.mrb[12].mxu1 }
 0x25b   :  { %v1335_v13 = vmul.f32 %v1517_v10, %v1174_v11  ;;  %v1247_v14 = vpop.f32.mrb[14].mxu0  ;;  %v1477_v15 = vpop.f32.mrb[13].mxu1 }
 0x25c   :  { %v1337_v16 = vmul.f32 %v1519_v12, %v1247_v14  ;;  %v1482_v17 = vpop.f32.mrb[15].mxu0 }
 0x25d   :  { %1345 = vst.msk [vmem:[%s1759_s3 + $0x28] sm:$0xff] %vm38_vm0, %v1335_v13 }
 0x25e   :  { %1346 = vst.msk [vmem:[%s1759_s3 + $0x30] sm:$0xff] %vm38_vm0, %v1337_v16  ;;  %v1320_v19 = vpop.f32.mrb[14].mxu1 }
 0x25f   :  { %v1339_v20 = vmul.f32 %v1521_v18, %v1320_v19  ;;  %v1487_v21 = vpop.f32.mrb[15].mxu1 }
 0x261   :  { %1347 = vst.msk [vmem:[%s1759_s3 + $0x38] sm:$0xff] %vm38_vm0, %v1339_v20 }

</bundles_post_ra>
